<compile_context>
chip_gen: v7x
topology: tpu7x:2x2x1
jax: 0.10.0
libtpu: 0.0.40
codegen_flags: <defaults>
</compile_context>

<pallas_src>
import math

import jax
import jax.numpy as jnp
from jax.experimental import pallas as pl
from jax.experimental.pallas import tpu as pltpu


STATE_DIM = 24            # BipedalWalker observation dim
ACTION_DIM = 4            # BipedalWalker action dim
IN_DIM = STATE_DIM + ACTION_DIM
H1, H2 = 400, 300         # logical (PyTorch) hidden widths
H1P, H2P = 512, 384       # 128-aligned padded widths used by the kernel
MAX_TILE_B = 1024         # max batch rows per grid step


def _disc_kernel(x_ref, w1_ref, b1_ref, w2_ref, b2_ref, w3_ref, b3_ref, o_ref):
    # Layer 1: (tile_b, 28) @ (28, 512) + (1, 512) -> tanh.  Single MXU pass.
    h1 = jnp.tanh(
        jnp.dot(x_ref[...], w1_ref[...], preferred_element_type=jnp.float32)
        + b1_ref[...])
    # Layer 2: (tile_b, 512) @ (512, 384) + (1, 384) -> tanh (value, no scratch).
    h2 = jnp.tanh(
        jnp.dot(h1, w2_ref[...], preferred_element_type=jnp.float32)
        + b2_ref[...])
    # Layer 3 (N = 1): VPU multiply + XLU lane reduce -- keep it off the MXU.
    logits = jnp.sum(h2 * w3_ref[...], axis=-1)                  # (tile_b,)
    # Lane-dense store: batch mapped to lanes -> (1, tile_b). b3 is an SMEM scalar.
    o_ref[...] = jax.nn.sigmoid(logits[None, :] + b3_ref[0]).astype(o_ref.dtype)


def _round_up(x, m):
    return ((x + m - 1) // m) * m


def _choose_tile_b(b):
    """128-aligned batch tile; >=2 grid steps once b > 128 (feeds both v7x TCs)."""
    if b <= 128:
        return 128
    half = _round_up(-(-b // 2), 128)
    return min(MAX_TILE_B, half)


def discriminator_forward(state, action, packed_params):
    """state: [B, 24], action: [B, 4]  ->  [B, 1] float32 in (0, 1)."""
    w1p, b1p, w2p, b2p, w3p, b3p = packed_params
    state = state.astype(jnp.float32)
    action = action.astype(jnp.float32)
    b = state.shape[0]

    # Concat once in the wrapper: layer 1 becomes a single K=28 MXU pass.
    x = jnp.concatenate([state, action], axis=1)

    tile_b = _choose_tile_b(b)
    n_tiles = -(-b // tile_b)
    b_pad = n_tiles * tile_b
    if b_pad != b:
        x = jnp.pad(x, ((0, b_pad - b), (0, 0)))

    cost = pl.CostEstimate(
        flops=2 * b_pad * (IN_DIM * H1P + H1P * H2P + H2P),
        transcendentals=b_pad * (H1P + H2P + 1),
        bytes_accessed=4 * (b_pad * (IN_DIM + 1)
                            + IN_DIM * H1P + H1P * H2P
                            + H1P + 2 * H2P + 1),
    )

    out_row = pl.pallas_call(
        _disc_kernel,
        out_shape=jax.ShapeDtypeStruct((1, b_pad), jnp.float32),
        grid=(n_tiles,),
        in_specs=[
            pl.BlockSpec((tile_b, IN_DIM), lambda i: (i, 0)),     # x tile
            pl.BlockSpec((IN_DIM, H1P), lambda i: (0, 0)),        # W1  (resident)
            pl.BlockSpec((1, H1P), lambda i: (0, 0)),             # b1
            pl.BlockSpec((H1P, H2P), lambda i: (0, 0)),           # W2  (resident)
            pl.BlockSpec((1, H2P), lambda i: (0, 0)),             # b2
            pl.BlockSpec((1, H2P), lambda i: (0, 0)),             # W3 row
            pl.BlockSpec(memory_space=pltpu.MemorySpace.SMEM),    # b3 scalar
        ],
        out_specs=pl.BlockSpec((1, tile_b), lambda i: (0, i)),    # lane-dense
        compiler_params=pltpu.CompilerParams(
            dimension_semantics=("parallel",),   # v7x: batch split over 2 TCs
            vmem_limit_bytes=32 * 1024 * 1024,
        ),
        cost_estimate=cost,
    )(x, w1p, b1p, w2p, b2p, w3p, b3p)

    # Wrapper-side layout plumbing back to the module's (B, 1) shape.
    return out_row[0, :b][:, None]


def init_params(key, state_dim=STATE_DIM, action_dim=ACTION_DIM):
    """Logical (PyTorch-shaped) params: nn.Linear default init
    (uniform(-1/sqrt(fan_in), 1/sqrt(fan_in)))."""
    ks = jax.random.split(key, 6)

    def linear(kw, kb, fan_in, fan_out):
        bound = 1.0 / math.sqrt(fan_in)
        w = jax.random.uniform(kw, (fan_in, fan_out), jnp.float32, -bound, bound)
        bb = jax.random.uniform(kb, (fan_out,), jnp.float32, -bound, bound)
        return w, bb

    w1, b1 = linear(ks[0], ks[1], state_dim + action_dim, H1)
    w2, b2 = linear(ks[2], ks[3], H1, H2)
    w3, b3 = linear(ks[4], ks[5], H2, 1)
    return (w1, b1, w2, b2, w3, b3)


def pack_params(params):
    """Zero-pad to 128-aligned widths for the kernel.  Exact: tanh(0)=0 and
    zero W2 rows / W3 entries contribute nothing to downstream sums."""
    w1, b1, w2, b2, w3, b3 = params
    w1p = jnp.zeros((IN_DIM, H1P), jnp.float32).at[:, :H1].set(w1)
    b1p = jnp.zeros((1, H1P), jnp.float32).at[0, :H1].set(b1)
    w2p = jnp.zeros((H1P, H2P), jnp.float32).at[:H1, :H2].set(w2)
    b2p = jnp.zeros((1, H2P), jnp.float32).at[0, :H2].set(b2)
    w3p = jnp.zeros((1, H2P), jnp.float32).at[0, :H2].set(w3[:, 0])
    b3p = jnp.asarray(b3, jnp.float32).reshape((1,))
    return (w1p, b1p, w2p, b2p, w3p, b3p)


def _reference_forward(state, action, params):
    """Pure-JAX reference on the unpadded logical weights (same math as PyTorch)."""
    w1, b1, w2, b2, w3, b3 = params
    x = jnp.concatenate([state, action], axis=1)
    h1 = jnp.tanh(x @ w1 + b1)
    h2 = jnp.tanh(h1 @ w2 + b2)
    return jax.nn.sigmoid(h2 @ w3 + b3)


if __name__ == "__main__":
    key = jax.random.PRNGKey(0)
    k_params, k_state, k_action = jax.random.split(key, 3)
    logical_params = init_params(k_params)
    packed_params = pack_params(logical_params)

    # batch=2/8 exercise the single 128-row tile path; batch=300 exercises a
    # 2-step grid (tile 256, padded to 512) with resident padded weights.
    for batch in (2, 8, 300):
        ks = jax.random.fold_in(k_state, batch)
        ka = jax.random.fold_in(k_action, batch)
        state = jax.random.normal(ks, (batch, STATE_DIM), jnp.float32)
        action = jax.random.normal(ka, (batch, ACTION_DIM), jnp.float32)

        out = jax.block_until_ready(
            discriminator_forward(state, action, packed_params))
        ref = _reference_forward(state, action, logical_params)

        assert out.shape == (batch, 1), out.shape
        err = float(jnp.max(jnp.abs(out - ref)))
        assert err < 1e-4, f"mismatch vs reference (batch={batch}): max abs err {err}"

    print("KERNEL_OK")
</pallas_src>

<mosaic_0001>
module attributes {stable_mosaic.version = 11 : i64} {
  func.func @_disc_kernel(%arg0: i32, %arg1: memref<128x28xf32, #tpu.memory_space<vmem>>, %arg2: memref<28x512xf32, #tpu.memory_space<vmem>>, %arg3: memref<1x512xf32, #tpu.memory_space<vmem>>, %arg4: memref<512x384xf32, #tpu.memory_space<vmem>>, %arg5: memref<1x384xf32, #tpu.memory_space<vmem>>, %arg6: memref<1x384xf32, #tpu.memory_space<vmem>>, %arg7: memref<1xf32, #tpu.memory_space<smem>>, %arg8: memref<1x128xf32, #tpu.memory_space<vmem>>) attributes {dimension_semantics = [#tpu.dimension_semantics<parallel>], iteration_bounds = array<i64: 1>, scalar_prefetch = 0 : i64, scratch_operands = 0 : i64, tpu.core_type = #tpu.core_type<tc>, window_params = [{transform_indices = @transform_0, window_bounds = array<i64: 128, 28>}, {pipeline_mode = #tpu.pipeline_mode<synchronous>, transform_indices = @transform_1, window_bounds = array<i64: 28, 512>}, {pipeline_mode = #tpu.pipeline_mode<synchronous>, transform_indices = @transform_2, window_bounds = array<i64: 1, 512>}, {pipeline_mode = #tpu.pipeline_mode<synchronous>, transform_indices = @transform_3, window_bounds = array<i64: 512, 384>}, {pipeline_mode = #tpu.pipeline_mode<synchronous>, transform_indices = @transform_4, window_bounds = array<i64: 1, 384>}, {pipeline_mode = #tpu.pipeline_mode<synchronous>, transform_indices = @transform_5, window_bounds = array<i64: 1, 384>}, {transform_indices = @transform_6, window_bounds = array<i64: 1>}, {transform_indices = @transform_7, window_bounds = array<i64: 1, 128>}]} {
    %c0 = arith.constant 0 : index
    %c0_0 = arith.constant 0 : index
    %0 = vector.load %arg1[%c0, %c0_0] : memref<128x28xf32, #tpu.memory_space<vmem>>, vector<128x28xf32>
    %c0_1 = arith.constant 0 : index
    %c0_2 = arith.constant 0 : index
    %1 = vector.load %arg2[%c0_1, %c0_2] : memref<28x512xf32, #tpu.memory_space<vmem>>, vector<28x512xf32>
    %cst = arith.constant dense<0.000000e+00> : vector<128x512xf32>
    %2 = tpu.matmul %0, %1, %cst {dimension_numbers = #tpu.dot_dimension_numbers<[1], [0], [0], [1], [0, 0, 1, 1], [], []>} : vector<128x28xf32>, vector<28x512xf32>, vector<128x512xf32> -> vector<128x512xf32>
    %c0_3 = arith.constant 0 : index
    %c0_4 = arith.constant 0 : index
    %3 = vector.load %arg3[%c0_3, %c0_4] : memref<1x512xf32, #tpu.memory_space<vmem>>, vector<1x512xf32>
    %4 = vector.broadcast %3 : vector<1x512xf32> to vector<128x512xf32>
    %5 = arith.addf %2, %4 : vector<128x512xf32>
    %6 = math.tanh %5 : vector<128x512xf32>
    %c0_5 = arith.constant 0 : index
    %c0_6 = arith.constant 0 : index
    %7 = vector.load %arg4[%c0_5, %c0_6] : memref<512x384xf32, #tpu.memory_space<vmem>>, vector<512x384xf32>
    %cst_7 = arith.constant dense<0.000000e+00> : vector<128x384xf32>
    %8 = tpu.matmul %6, %7, %cst_7 {dimension_numbers = #tpu.dot_dimension_numbers<[1], [0], [0], [1], [0, 0, 1, 1], [], []>} : vector<128x512xf32>, vector<512x384xf32>, vector<128x384xf32> -> vector<128x384xf32>
    %c0_8 = arith.constant 0 : index
    %c0_9 = arith.constant 0 : index
    %9 = vector.load %arg5[%c0_8, %c0_9] : memref<1x384xf32, #tpu.memory_space<vmem>>, vector<1x384xf32>
    %10 = vector.broadcast %9 : vector<1x384xf32> to vector<128x384xf32>
    %11 = arith.addf %8, %10 : vector<128x384xf32>
    %12 = math.tanh %11 : vector<128x384xf32>
    %c0_10 = arith.constant 0 : index
    %c0_11 = arith.constant 0 : index
    %13 = vector.load %arg6[%c0_10, %c0_11] : memref<1x384xf32, #tpu.memory_space<vmem>>, vector<1x384xf32>
    %14 = vector.broadcast %13 : vector<1x384xf32> to vector<128x384xf32>
    %15 = arith.mulf %12, %14 : vector<128x384xf32>
    %cst_12 = arith.constant dense<0.000000e+00> : vector<128xf32>
    %16 = vector.multi_reduction <add>, %15, %cst_12 [1] : vector<128x384xf32> to vector<128xf32>
    %17 = vector.shape_cast %16 : vector<128xf32> to vector<1x128xf32>
    %c0_13 = arith.constant 0 : index
    %18 = memref.load %arg7[%c0_13] : memref<1xf32, #tpu.memory_space<smem>>
    %19 = vector.broadcast %18 : f32 to vector<1x128xf32>
    %20 = arith.addf %17, %19 : vector<1x128xf32>
    %21 = arith.negf %20 : vector<1x128xf32>
    %22 = math.exp %21 : vector<1x128xf32>
    %cst_14 = arith.constant 1.000000e+00 : f32
    %23 = vector.broadcast %cst_14 : f32 to vector<1x128xf32>
    %24 = arith.addf %23, %22 : vector<1x128xf32>
    %25 = arith.divf %23, %24 : vector<1x128xf32>
    %c0_15 = arith.constant 0 : index
    %c0_16 = arith.constant 0 : index
    %26 = vector.load %arg8[%c0_15, %c0_16] : memref<1x128xf32, #tpu.memory_space<vmem>>, vector<1x128xf32>
    tpu.vector_store %arg8[%c0_15, %c0_16], %25 {strides = array<i32>} : memref<1x128xf32, #tpu.memory_space<vmem>>, vector<1x128xf32>,
    return
  }
  func.func @transform_0(%arg0: i32) -> (i32, i32) {
    %c0_i32 = arith.constant 0 : i32
    %c0_i32_0 = arith.constant 0 : i32
    return %arg0, %c0_i32 : i32, i32
  }
  func.func @transform_1(%arg0: i32) -> (i32, i32) {
    %c0_i32 = arith.constant 0 : i32
    %c0_i32_0 = arith.constant 0 : i32
    %c0_i32_1 = arith.constant 0 : i32
    return %c0_i32, %c0_i32_0 : i32, i32
  }
  func.func @transform_2(%arg0: i32) -> (i32, i32) {
    %c0_i32 = arith.constant 0 : i32
    %c0_i32_0 = arith.constant 0 : i32
    %c0_i32_1 = arith.constant 0 : i32
    return %c0_i32, %c0_i32_0 : i32, i32
  }
  func.func @transform_3(%arg0: i32) -> (i32, i32) {
    %c0_i32 = arith.constant 0 : i32
    %c0_i32_0 = arith.constant 0 : i32
    %c0_i32_1 = arith.constant 0 : i32
    return %c0_i32, %c0_i32_0 : i32, i32
  }
  func.func @transform_4(%arg0: i32) -> (i32, i32) {
    %c0_i32 = arith.constant 0 : i32
    %c0_i32_0 = arith.constant 0 : i32
    %c0_i32_1 = arith.constant 0 : i32
    return %c0_i32, %c0_i32_0 : i32, i32
  }
  func.func @transform_5(%arg0: i32) -> (i32, i32) {
    %c0_i32 = arith.constant 0 : i32
    %c0_i32_0 = arith.constant 0 : i32
    %c0_i32_1 = arith.constant 0 : i32
    return %c0_i32, %c0_i32_0 : i32, i32
  }
  func.func @transform_6(%arg0: i32) -> i32 {
    %c0_i32 = arith.constant 0 : i32
    %c0_i32_0 = arith.constant 0 : i32
    return %c0_i32 : i32
  }
  func.func @transform_7(%arg0: i32) -> (i32, i32) {
    %c0_i32 = arith.constant 0 : i32
    %c0_i32_0 = arith.constant 0 : i32
    return %c0_i32, %arg0 : i32, i32
  }
}

</mosaic_0001>

<bundles_post_ra>
// kernel: tpu_custom_call.1
= control target key start
LH: loop header
LB: loop body
LE: loop exit
PB: predicated region body
PF: predicated region fallthrough
CT: control target
= control target key end

     0   :  { %13 = vsyncpa [#allocation4], 0  ;;  %s3298_s0 = inlined_call_operand.vmem [shape: f32[128,28], index: 0, kind: input, shape index: {}]   ;;  %s3299_s1 = inlined_call_operand.vmem [shape: f32[28,512], index: 1, kind: input, shape index: {}]   ;;  %s3300_s2 = inlined_call_operand.vmem [shape: f32[1,512], index: 2, kind: input, shape index: {}]   ;;  %s3301_s3 = inlined_call_operand.hbm [shape: f32[512,384], index: 3, kind: input, shape index: {}]   ;;  %s3302_s4 = inlined_call_operand.vmem [shape: f32[1,384], index: 4, kind: input, shape index: {}]   ;;  %s3303_s5 = inlined_call_operand.vmem [shape: f32[1,384], index: 5, kind: input, shape index: {}]   ;;  %s3304_s6 = inlined_call_operand.<no memory space> [shape: f32[1], index: 6, kind: input, shape index: {}]   ;;  %s3305_s7 = inlined_call_operand.hbm [shape: f32[1,128], index: 7, kind: output, shape index: {}]  }
   0x1   :  { %14 = vsyncpa [#allocation5], 0  ;;  %s2630_s24 = smov [#allocation3]   ;;  %s2582_s28 = scalar_lea.hbm %s3301_s3, 24576 }
   0x2   :  { %s26_s25 = sshll.u32 %s2630_s24, 4  ;;  %p2583_p0 = scmp.ne.s32.totalorder %s3301_s3, %s2582_s28  ;;  %s27_s25 = int_to_ptr.vmem [resolvable:$true] %s26_s25 }
   0x3   :  { %p2586_p1 = scmp.lt.u32.totalorder %s2582_s28, %s3301_s3 }
   0x5   :  { %p2588_p2 = pnand %p2586_p1, %p2583_p0 }
   0x7   :  { %2591 = shalt.err (!%p2588_p2)
}
   0x8   :  { %s2592_s10 = scalar_lea.vmem %s27_s25, 24576  ;;  %p2597_p4 = scmp.lt.s32.totalorder %s27_s25, %s27_s25 }
   0x9   :  { %p2593_p3 = scmp.ne.s32.totalorder %s27_s25, %s2592_s10  ;;  %p2598_p5 = scmp.lt.s32.totalorder %s2592_s10, %s2592_s10 }
   0xb   :  { %p2599_p6 = por %p2598_p5, %p2597_p4 }
   0xd   :  { %p2600_p7 = pnand %p2599_p6, %p2593_p3 }
   0xf   :  { %2603 = shalt.err (!%p2600_p7)
}
  0x10   :  { %s2631_s11 = smov 384   ;;  %s2632_s12 = smov 24  }
  0x11   :  { %32 = dma.hbm_to_vmem [thread:$0]  %s3301_s3, 24576, %s27_s25, [#allocation4], %s2631_s11, %s2631_s11, %s2632_s12  }
  0x12   :  { %2626 = dma.done.wait [#allocation4], 24576  }
  0x13   :  { %2627 = vsyncadd [#allocation4], 4294942720  ;;  %v2633_v0 = vmov 0.0   ;;  %vm145_vm0 = vcmask 1043456   ;;  %v59_v1 = vld [vmem:[%s3299_s1 + $0x8] sm:$0xff]  ;;  %v58_v3 = vld [vmem:[%s3299_s1] sm:$0xff] }
  0x14   :  { %222 = vmatprep.mubr.f32.mxu0 %v2633_v0  ;;  %383 = vmatprep.mubr.f32.mxu1 %v2633_v0  ;;  %v63_v2 = vld [vmem:[%s3299_s1 + $0x28] sm:$0xff]  ;;  %v62_v5 = vld [vmem:[%s3299_s1 + $0x20] sm:$0xff]  ;;  %vm2634_vm1 = vmmov 1   ;;  %v61_v14 = vld [vmem:[%s3299_s1 + $0x18] sm:$0xff]  ;;  %vm96_vm3 = vcmask 228352   ;;  %vm1683_vm4 = vcmask 130112  }
  0x15   :  { %v2012_v4 = vpack.c.bf16 %v63_v2, %v59_v1  ;;  %v67_v6 = vld [vmem:[%s3299_s1 + $0x48] sm:$0xff]  ;;  %v2014_v8 = vpack.c.bf16 %v62_v5, %v58_v3  ;;  %vm2708_vm2 = vmpackc.low %vm145_vm0, %vm2634_vm1  ;;  %v66_v11 = vld [vmem:[%s3299_s1 + $0x40] sm:$0xff]  ;;  %vm1690_vm5 = vcmask 195712   ;;  %vm1697_vm6 = vcmask 261312  }
  0x16   :  { %v71_v7 = vld [vmem:[%s3299_s1 + $0x68] sm:$0xf]  ;;  %v70_v12 = vld [vmem:[%s3299_s1 + $0x60] sm:$0xf]  ;;  %v65_v15 = vld [vmem:[%s3299_s1 + $0x38] sm:$0xff]  ;;  %vm1704_vm7 = vcmask 326912  }
  0x17   :  { %v2016_v9 = vpack.c.bf16 %v71_v7, %v67_v6  ;;  %2013 = vmatprep.subr.bf16.mxu0 %v2012_v4  ;;  %v2019_v13 = vpack.c.bf16 %v70_v12, %v66_v11  ;;  %v42_v16 = vld [vmem:[%s3298_s0] sm:$0xff]  ;;  %v2022_v17 = vpack.c.bf16 %v65_v15, %v61_v14  ;;  %v60_v18 = vld [vmem:[%s3299_s1 + $0x10] sm:$0xff]  ;;  %v69_v21 = vld [vmem:[%s3299_s1 + $0x58] sm:$0xff]  ;;  %vm1711_vm8 = vcmask 392512  }
  0x18   :  { %2015 = vmatpush1.bf16.msra.mxu0 %v2014_v8  ;;  %v64_v19 = vld [vmem:[%s3299_s1 + $0x30] sm:$0xff]  ;;  %v73_v22 = vld [vmem:[%s3299_s1 + $0x78] sm:$0xf]  ;;  %v2746_v23 = vld [vmem:[%s3298_s0 + $0x8] sm:$0xff]  ;;  %vm1718_vm9 = vcmask 458112   ;;  %vm1725_vm10 = vcmask 523712  }
  0x19   :  { %2018 = vmatprep.subr.msk.bf16.mxu0 %vm2708_vm2, %v2016_v9  ;;  %v2024_v20 = vpack.c.bf16 %v64_v19, %v60_v18  ;;  %2023 = vmatprep.subr.bf16.mxu1 %v2022_v17  ;;  %v2026_v24 = vpack.c.bf16 %v73_v22, %v69_v21  ;;  %v68_v25 = vld [vmem:[%s3299_s1 + $0x50] sm:$0xff]  ;;  %v545_v27 = vld [vmem:[#allocation3 + $0x8] sm:$0xff]  ;;  %v548_v29 = vld [vmem:[#allocation3 + $0x20] sm:$0xff]  ;;  %vm1732_vm11 = vcmask 589312   ;;  %vm1739_vm12 = vcmask 654912  }
  0x1a   :  { %v72_v26 = vld [vmem:[%s3299_s1 + $0x70] sm:$0xf]  ;;  %v597_v31 = vld [vmem:[#allocation3 + $0x1a8] sm:$0xff]  ;;  %v2032_v32 = vpack.c.bf16 %v548_v29, %v545_v27  ;;  %v544_v34 = vld [vmem:[#allocation3] sm:$0xff]  ;;  %vm1746_vm13 = vcmask 720512   ;;  %vm1753_vm14 = vcmask 786112  }
  0x1b   :  { %2025 = vmatpush1.bf16.msra.mxu1 %v2024_v20  ;;  %v2029_v28 = vpack.c.bf16 %v72_v26, %v68_v25  ;;  %v594_v30 = vld [vmem:[#allocation3 + $0x190] sm:$0xff]  ;;  %v547_v35 = vld [vmem:[#allocation3 + $0x18] sm:$0xff]  ;;  %v549_v38 = vld [vmem:[#allocation3 + $0x28] sm:$0xff]  ;;  %vm1760_vm15 = vcmask 851712   ;;  %vm1767_vm0 = vcmask 917312   ;;  %vm1774_vm1 = vcmask 982912  }
  0x1c   :  { %2021 = vmatpush1.bf16.msk.msra.mxu0 %vm2708_vm2, %v2019_v13  ;;  %2028 = vmatprep.subr.msk.bf16.mxu1 %vm2708_vm2, %v2026_v24  ;;  %v2160_v33 = vpack.c.bf16 %v597_v31, %v594_v30  ;;  %v546_v36 = vld [vmem:[#allocation3 + $0x10] sm:$0xff]  ;;  %v2034_v37 = vpack.c.bf16 %v547_v35, %v544_v34  ;;  %v551_v39 = vld [vmem:[#allocation3 + $0x38] sm:$0xff]  ;;  %v553_v43 = vld [vmem:[#allocation3 + $0x48] sm:$0xff] }
  0x1d   :  { %v554_v40 = vld [vmem:[#allocation3 + $0x50] sm:$0xff]  ;;  %2033 = vmatprep.subr.bf16.mxu0 %v2032_v32  ;;  %v557_v44 = vld [vmem:[#allocation3 + $0x68] sm:$0xff]  ;;  %v560_v45 = vld [vmem:[#allocation3 + $0x80] sm:$0xff]  ;;  %v2162_v49 = vpack.c.bf16 %v549_v38, %v546_v36 }
  0x1e   :  { %v2036_v41 = vpack.c.bf16 %v554_v40, %v551_v39  ;;  %v550_v42 = vld [vmem:[#allocation3 + $0x30] sm:$0xff]  ;;  %v600_v46 = vld [vmem:[#allocation3 + $0x1c0] sm:$0xff]  ;;  %v603_v47 = vld [vmem:[#allocation3 + $0x1d8] sm:$0xff]  ;;  %v2040_v54 = vpack.c.bf16 %v560_v45, %v557_v44 }
  0x1f   :  { %1802 = vmatmul.mubr.msk.f32.vlgmr.msra.gmra.mrb[0].mxu0 %vm96_vm3, %v42_v16  ;;  %2031 = vmatpush1.bf16.msk.msra.mxu1 %vm2708_vm2, %v2029_v28  ;;  %v44_v48 = vld [vmem:[%s3298_s0 + $0x10] sm:$0xff]  ;;  %v2038_v50 = vpack.c.bf16 %v553_v43, %v550_v42  ;;  %v2164_v51 = vpack.c.bf16 %v603_v47, %v600_v46  ;;  %v552_v52 = vld [vmem:[#allocation3 + $0x40] sm:$0xff]  ;;  %v555_v53 = vld [vmem:[#allocation3 + $0x58] sm:$0xff]  ;;  %vm1781_vm2 = vcmask 1048512  }
  0x20   :  { %228 = vmatprep.mubr.f32.mxu0 %v2633_v0  ;;  %2161 = vmatprep.subr.bf16.mxu1 %v2160_v33  ;;  %v556_v55 = vld [vmem:[#allocation3 + $0x60] sm:$0xff]  ;;  %v559_v56 = vld [vmem:[#allocation3 + $0x78] sm:$0xff]  ;;  %v566_v58 = vld [vmem:[#allocation3 + $0xb0] sm:$0xff]  ;;  %v2166_v62 = vpack.c.bf16 %v555_v53, %v552_v52 }
  0x21   :  { %2035 = vmatpush1.bf16.msra.mxu0 %v2034_v37  ;;  %v563_v57 = vld [vmem:[#allocation3 + $0x98] sm:$0xff]  ;;  %v606_v59 = vld [vmem:[#allocation3 + $0x1f0] sm:$0xff]  ;;  %v609_v60 = vld [vmem:[#allocation3 + $0x208] sm:$0xff]  ;;  %v2042_v63 = vpack.c.bf16 %v559_v56, %v556_v55 }
  0x22   :  { %1820 = vmatmul.mubr.msk.f32.vlgmr.msra.gmra.mrb[0].mxu1 %vm96_vm3, %v42_v16  ;;  %2037 = vmatprep.subr.bf16.mxu0 %v2036_v41  ;;  %v45_v61 = vld [vmem:[%s3298_s0 + $0x18] sm:$0xff]  ;;  %v2168_v1 = vpack.c.bf16 %v609_v60, %v606_v59  ;;  %v558_v2 = vld [vmem:[#allocation3 + $0x70] sm:$0xff]  ;;  %v561_v3 = vld [vmem:[#allocation3 + $0x88] sm:$0xff]  ;;  %v2044_v4 = vpack.c.bf16 %v566_v58, %v563_v57 }
  0x23   :  { %1803 = vmatmul.mubr.msk.f32.gmra.mrb[2].mxu0 %vm96_vm3, %v2746_v23  ;;  %389 = vmatprep.mubr.f32.mxu1 %v2633_v0  ;;  %v562_v5 = vld [vmem:[#allocation3 + $0x90] sm:$0xff]  ;;  %v565_v6 = vld [vmem:[#allocation3 + $0xa8] sm:$0xff]  ;;  %v572_v8 = vld [vmem:[#allocation3 + $0xe0] sm:$0xff]  ;;  %v2170_v12 = vpack.c.bf16 %v561_v3, %v558_v2 }
  0x24   :  { %234 = vmatprep.mubr.f32.mxu0 %v2633_v0  ;;  %2163 = vmatpush3.bf16.msra.mxu1 %v2162_v49  ;;  %v569_v7 = vld [vmem:[#allocation3 + $0xc8] sm:$0xff]  ;;  %v612_v9 = vld [vmem:[#allocation3 + $0x220] sm:$0xff]  ;;  %v615_v10 = vld [vmem:[#allocation3 + $0x238] sm:$0xff]  ;;  %v2046_v13 = vpack.c.bf16 %v565_v6, %v562_v5 }
  0x25   :  { %2039 = vmatpush1.bf16.msra.mxu0 %v2038_v50  ;;  %2165 = vmatprep.subr.bf16.mxu1 %v2164_v51  ;;  %v46_v11 = vld [vmem:[%s3298_s0 + $0x20] sm:$0xff]  ;;  %v2172_v14 = vpack.c.bf16 %v615_v10, %v612_v9  ;;  %v567_v16 = vld [vmem:[#allocation3 + $0xb8] sm:$0xff]  ;;  %v2048_v17 = vpack.c.bf16 %v572_v8, %v569_v7  ;;  %v578_v21 = vld [vmem:[#allocation3 + $0x110] sm:$0xff] }
  0x26   :  { %1821 = vmatmul.mubr.msk.f32.gmra.mrb[2].mxu1 %vm96_vm3, %v2746_v23  ;;  %2041 = vmatprep.subr.bf16.mxu0 %v2040_v54  ;;  %v564_v15 = vld [vmem:[#allocation3 + $0xa0] sm:$0xff]  ;;  %v571_v19 = vld [vmem:[#allocation3 + $0xd8] sm:$0xff]  ;;  %v618_v22 = vld [vmem:[#allocation3 + $0x250] sm:$0xff] }
  0x27   :  { %1804 = vmatmul.mubr.msk.f32.gmra.mrb[4].mxu0 %vm96_vm3, %v44_v48  ;;  %395 = vmatprep.mubr.f32.mxu1 %v2633_v0  ;;  %v568_v18 = vld [vmem:[#allocation3 + $0xc0] sm:$0xff]  ;;  %v575_v20 = vld [vmem:[#allocation3 + $0xf8] sm:$0xff]  ;;  %v621_v23 = vld [vmem:[#allocation3 + $0x268] sm:$0xff]  ;;  %v2174_v25 = vpack.c.bf16 %v567_v16, %v564_v15 }
  0x28   :  { %240 = vmatprep.mubr.f32.mxu0 %v2633_v0  ;;  %2167 = vmatpush3.bf16.msra.mxu1 %v2166_v62  ;;  %v47_v24 = vld [vmem:[%s3298_s0 + $0x28] sm:$0xff]  ;;  %v2050_v26 = vpack.c.bf16 %v571_v19, %v568_v18  ;;  %v2176_v27 = vpack.c.bf16 %v621_v23, %v618_v22  ;;  %v570_v28 = vld [vmem:[#allocation3 + $0xd0] sm:$0xff]  ;;  %v2052_v30 = vpack.c.bf16 %v578_v21, %v575_v20  ;;  %v584_v34 = vld [vmem:[#allocation3 + $0x140] sm:$0xff] }
  0x29   :  { %2043 = vmatpush1.bf16.msra.mxu0 %v2042_v63  ;;  %2169 = vmatprep.subr.bf16.mxu1 %v2168_v1  ;;  %v573_v29 = vld [vmem:[#allocation3 + $0xe8] sm:$0xff]  ;;  %v574_v31 = vld [vmem:[#allocation3 + $0xf0] sm:$0xff]  ;;  %v624_v35 = vld [vmem:[#allocation3 + $0x280] sm:$0xff] }
  0x2a   :  { %1822 = vmatmul.mubr.msk.f32.gmra.mrb[4].mxu1 %vm96_vm3, %v44_v48  ;;  %2045 = vmatprep.subr.bf16.mxu0 %v2044_v4  ;;  %v577_v32 = vld [vmem:[#allocation3 + $0x108] sm:$0xff]  ;;  %v627_v36 = vld [vmem:[#allocation3 + $0x298] sm:$0xff]  ;;  %v48_v37 = vld [vmem:[%s3298_s0 + $0x30] sm:$0xff]  ;;  %v2178_v38 = vpack.c.bf16 %v573_v29, %v570_v28 }
  0x2b   :  { %1805 = vmatmul.mubr.msk.f32.gmra.mrb[6].mxu0 %vm96_vm3, %v45_v61  ;;  %401 = vmatprep.mubr.f32.mxu1 %v2633_v0  ;;  %v581_v33 = vld [vmem:[#allocation3 + $0x128] sm:$0xff]  ;;  %v2054_v39 = vpack.c.bf16 %v577_v32, %v574_v31  ;;  %v2180_v40 = vpack.c.bf16 %v627_v36, %v624_v35  ;;  %v576_v41 = vld [vmem:[#allocation3 + $0x100] sm:$0xff]  ;;  %v579_v42 = vld [vmem:[#allocation3 + $0x118] sm:$0xff] }
  0x2c   :  { %246 = vmatprep.mubr.f32.mxu0 %v2633_v0  ;;  %2171 = vmatpush3.bf16.msra.mxu1 %v2170_v12  ;;  %v2056_v43 = vpack.c.bf16 %v584_v34, %v581_v33  ;;  %v580_v44 = vld [vmem:[#allocation3 + $0x120] sm:$0xff]  ;;  %v583_v45 = vld [vmem:[#allocation3 + $0x138] sm:$0xff]  ;;  %v590_v47 = vld [vmem:[#allocation3 + $0x170] sm:$0xff]  ;;  %v2182_v51 = vpack.c.bf16 %v579_v42, %v576_v41 }
  0x2d   :  { %2047 = vmatpush1.bf16.msra.mxu0 %v2046_v13  ;;  %2173 = vmatprep.subr.bf16.mxu1 %v2172_v14  ;;  %v587_v46 = vld [vmem:[#allocation3 + $0x158] sm:$0xff]  ;;  %v630_v48 = vld [vmem:[#allocation3 + $0x2b0] sm:$0xff]  ;;  %v633_v49 = vld [vmem:[#allocation3 + $0x2c8] sm:$0xff]  ;;  %v2058_v52 = vpack.c.bf16 %v583_v45, %v580_v44 }
  0x2e   :  { %1823 = vmatmul.mubr.msk.f32.gmra.mrb[6].mxu1 %vm96_vm3, %v45_v61  ;;  %2049 = vmatprep.subr.bf16.mxu0 %v2048_v17  ;;  %v49_v50 = vld [vmem:[%s3298_s0 + $0x38] sm:$0xff]  ;;  %v2184_v53 = vpack.c.bf16 %v633_v49, %v630_v48  ;;  %v2060_v54 = vpack.c.bf16 %v590_v47, %v587_v46  ;;  %v586_v55 = vld [vmem:[#allocation3 + $0x150] sm:$0xff]  ;;  %v589_v56 = vld [vmem:[#allocation3 + $0x168] sm:$0xff] }
  0x2f   :  { %1806 = vmatmul.mubr.msk.f32.gmra.mrb[8].mxu0 %vm96_vm3, %v46_v11  ;;  %407 = vmatprep.mubr.f32.mxu1 %v2633_v0  ;;  %v593_v57 = vld [vmem:[#allocation3 + $0x188] sm:$0xff]  ;;  %v596_v58 = vld [vmem:[#allocation3 + $0x1a0] sm:$0xff]  ;;  %v2062_v60 = vpack.c.bf16 %v589_v56, %v586_v55  ;;  %v595_v63 = vld [vmem:[#allocation3 + $0x198] sm:$0xff] }
  0x30   :  { %252 = vmatprep.mubr.f32.mxu0 %v2633_v0  ;;  %2175 = vmatpush3.bf16.msra.mxu1 %v2174_v25  ;;  %v50_v59 = vld [vmem:[%s3298_s0 + $0x40] sm:$0xff]  ;;  %v2064_v61 = vpack.c.bf16 %v596_v58, %v593_v57  ;;  %v599_v1 = vld [vmem:[#allocation3 + $0x1b8] sm:$0xff]  ;;  %v602_v2 = vld [vmem:[#allocation3 + $0x1d0] sm:$0xff] }
  0x31   :  { %2051 = vmatpush1.bf16.msra.mxu0 %v2050_v26  ;;  %2177 = vmatprep.subr.bf16.mxu1 %v2176_v27  ;;  %v592_v62 = vld [vmem:[#allocation3 + $0x180] sm:$0xff]  ;;  %v51_v3 = vld [vmem:[%s3298_s0 + $0x48] sm:$0xff]  ;;  %v2068_v5 = vpack.c.bf16 %v602_v2, %v599_v1  ;;  %v598_v6 = vld [vmem:[#allocation3 + $0x1b0] sm:$0xff]  ;;  %v76_v2 = vlaneseq }
  0x32   :  { %1824 = vmatmul.mubr.msk.f32.gmra.mrb[8].mxu1 %vm96_vm3, %v46_v11  ;;  %2053 = vmatprep.subr.bf16.mxu0 %v2052_v30  ;;  %v2066_v4 = vpack.c.bf16 %v595_v63, %v592_v62  ;;  %v601_v7 = vld [vmem:[#allocation3 + $0x1c8] sm:$0xff]  ;;  %v608_v9 = vld [vmem:[#allocation3 + $0x200] sm:$0xff]  ;;  %v52_v10 = vld [vmem:[%s3298_s0 + $0x50] sm:$0xff] }
  0x33   :  { %1807 = vmatmul.mubr.msk.f32.gmra.mrb[10].mxu0 %vm96_vm3, %v47_v24  ;;  %413 = vmatprep.mubr.f32.mxu1 %v2633_v0  ;;  %v605_v8 = vld [vmem:[#allocation3 + $0x1e8] sm:$0xff]  ;;  %v2070_v11 = vpack.c.bf16 %v601_v7, %v598_v6  ;;  %v604_v13 = vld [vmem:[#allocation3 + $0x1e0] sm:$0xff]  ;;  %v607_v14 = vld [vmem:[#allocation3 + $0x1f8] sm:$0xff] }
  0x34   :  { %258 = vmatprep.mubr.f32.mxu0 %v2633_v0  ;;  %2179 = vmatpush3.bf16.msra.mxu1 %v2178_v38  ;;  %v2072_v12 = vpack.c.bf16 %v608_v9, %v605_v8  ;;  %v611_v15 = vld [vmem:[#allocation3 + $0x218] sm:$0xff]  ;;  %v614_v16 = vld [vmem:[#allocation3 + $0x230] sm:$0xff]  ;;  %v2074_v18 = vpack.c.bf16 %v607_v14, %v604_v13  ;;  %v613_v21 = vld [vmem:[#allocation3 + $0x228] sm:$0xff] }
  0x35   :  { %2055 = vmatpush1.bf16.msra.mxu0 %v2054_v39  ;;  %2181 = vmatprep.subr.bf16.mxu1 %v2180_v40  ;;  %v53_v17 = vld [vmem:[%s3298_s0 + $0x58] sm:$0xff]  ;;  %v2076_v19 = vpack.c.bf16 %v614_v16, %v611_v15  ;;  %v610_v20 = vld [vmem:[#allocation3 + $0x210] sm:$0xff]  ;;  %v617_v22 = vld [vmem:[#allocation3 + $0x248] sm:$0xff] }
  0x36   :  { %1825 = vmatmul.mubr.msk.f32.gmra.mrb[10].mxu1 %vm96_vm3, %v47_v24  ;;  %2057 = vmatprep.subr.bf16.mxu0 %v2056_v43  ;;  %v620_v23 = vld [vmem:[#allocation3 + $0x260] sm:$0xff]  ;;  %v2078_v25 = vpack.c.bf16 %v613_v21, %v610_v20  ;;  %v55_v27 = vld [vmem:[%s3298_s0 + $0x68] sm:$0xff]  ;;  %v56_v28 = vld [vmem:[%s3298_s0 + $0x70] sm:$0xff] }
  0x37   :  { %1808 = vmatmul.mubr.msk.f32.gmra.mrb[12].mxu0 %vm96_vm3, %v48_v37  ;;  %419 = vmatprep.mubr.f32.mxu1 %v2633_v0  ;;  %v54_v24 = vld [vmem:[%s3298_s0 + $0x60] sm:$0xff]  ;;  %v2080_v26 = vpack.c.bf16 %v620_v23, %v617_v22  ;;  %v57_v29 = vld [vmem:[%s3298_s0 + $0x78] sm:$0xff]  ;;  %v626_v34 = vld [vmem:[#allocation3 + $0x290] sm:$0xff] }
  0x38   :  { %264 = vmatprep.mubr.f32.mxu0 %v2633_v0  ;;  %2183 = vmatpush3.bf16.msra.mxu1 %v2182_v51  ;;  %v616_v30 = vld [vmem:[#allocation3 + $0x240] sm:$0xff]  ;;  %v619_v31 = vld [vmem:[#allocation3 + $0x258] sm:$0xff]  ;;  %v622_v36 = vld [vmem:[#allocation3 + $0x270] sm:$0xff] }
  0x39   :  { %2059 = vmatpush1.bf16.msra.mxu0 %v2058_v52  ;;  %2185 = vmatprep.subr.bf16.mxu1 %v2184_v53  ;;  %v2082_v32 = vpack.c.bf16 %v619_v31, %v616_v30  ;;  %v623_v33 = vld [vmem:[#allocation3 + $0x278] sm:$0xff]  ;;  %v582_v38 = vld [vmem:[#allocation3 + $0x130] sm:$0xff]  ;;  %v585_v39 = vld [vmem:[#allocation3 + $0x148] sm:$0xff] }
  0x3a   :  { %1826 = vmatmul.mubr.msk.f32.gmra.mrb[12].mxu1 %vm96_vm3, %v48_v37  ;;  %2061 = vmatprep.subr.bf16.mxu0 %v2060_v54  ;;  %v2084_v35 = vpack.c.bf16 %v626_v34, %v623_v33  ;;  %v625_v37 = vld [vmem:[#allocation3 + $0x288] sm:$0xff]  ;;  %v2186_v41 = vpack.c.bf16 %v585_v39, %v582_v38  ;;  %v632_v43 = vld [vmem:[#allocation3 + $0x2c0] sm:$0xff]  ;;  %v631_v45 = vld [vmem:[#allocation3 + $0x2b8] sm:$0xff] }
  0x3b   :  { %1809 = vmatmul.mubr.msk.f32.gmra.mrb[14].mxu0 %vm96_vm3, %v49_v50  ;;  %425 = vmatprep.mubr.f32.mxu1 %v2633_v0  ;;  %v2086_v40 = vpack.c.bf16 %v625_v37, %v622_v36  ;;  %v629_v42 = vld [vmem:[#allocation3 + $0x2a8] sm:$0xff]  ;;  %v628_v44 = vld [vmem:[#allocation3 + $0x2a0] sm:$0xff]  ;;  %v639_v48 = vld [vmem:[#allocation3 + $0x2f8] sm:$0xff] }
  0x3c   :  { %270 = vmatprep.mubr.f32.mxu0 %v2633_v0  ;;  %2187 = vmatpush3.bf16.msra.mxu1 %v2186_v41  ;;  %v2090_v46 = vpack.c.bf16 %v631_v45, %v628_v44  ;;  %v636_v47 = vld [vmem:[#allocation3 + $0x2e0] sm:$0xff]  ;;  %v638_v51 = vld [vmem:[#allocation3 + $0x2f0] sm:$0xff]  ;;  %v591_v53 = vld [vmem:[#allocation3 + $0x178] sm:$0xff] }
  0x3d   :  { %2063 = vmatpush1.bf16.msra.mxu0 %v2062_v60  ;;  %v2188_v49 = vpack.c.bf16 %v639_v48, %v636_v47  ;;  %v588_v52 = vld [vmem:[#allocation3 + $0x160] sm:$0xff]  ;;  %v634_v55 = vld [vmem:[#allocation3 + $0x2d0] sm:$0xff]  ;;  %v637_v57 = vld [vmem:[#allocation3 + $0x2e8] sm:$0xff] }
  0x3e   :  { %1827 = vmatmul.mubr.msk.f32.gmra.mrb[14].mxu1 %vm96_vm3, %v49_v50  ;;  %2065 = vmatprep.subr.bf16.mxu0 %v2064_v61  ;;  %v635_v50 = vld [vmem:[#allocation3 + $0x2d8] sm:$0xff]  ;;  %v2190_v56 = vpack.c.bf16 %v591_v53, %v588_v52  ;;  %v2094_v58 = vpack.c.bf16 %v637_v57, %v634_v55  ;;  %v644_v60 = vld [vmem:[#allocation3 + $0x320] sm:$0xff]  ;;  %v690_v62 = vld [vmem:[#allocation3 + $0x490] sm:$0xff] }
  0x3f   :  { %1810 = vmatmul.mubr.msk.f32.gmra.mrb[16].mxu0 %vm96_vm3, %v50_v59  ;;  %431 = vmatprep.mubr.f32.mxu1 %v2633_v0  ;;  %v2092_v54 = vpack.c.bf16 %v638_v51, %v635_v50  ;;  %v693_v63 = vld [vmem:[#allocation3 + $0x4a8] sm:$0xff]  ;;  %v640_v22 = vld [vmem:[#allocation3 + $0x300] sm:$0xff]  ;;  %v643_v23 = vld [vmem:[#allocation3 + $0x318] sm:$0xff] }
  0x40   :  { %276 = vmatprep.mubr.f32.mxu0 %v2633_v0  ;;  %2189 = vmatprep.subr.bf16.mxu1 %v2188_v49  ;;  %v2192_v1 = vpack.c.bf16 %v693_v63, %v690_v62  ;;  %v699_v30 = vld [vmem:[#allocation3 + $0x4d8] sm:$0xff]  ;;  %v2098_v36 = vpack.c.bf16 %v643_v23, %v640_v22  ;;  %v646_v38 = vld [vmem:[#allocation3 + $0x330] sm:$0xff]  ;;  %v649_v39 = vld [vmem:[#allocation3 + $0x348] sm:$0xff] }
  0x41   :  { %2067 = vmatpush1.bf16.msra.mxu0 %v2066_v4  ;;  %2191 = vmatpush3.bf16.msra.mxu1 %v2190_v56  ;;  %v648_v44 = vld [vmem:[#allocation3 + $0x340] sm:$0xff]  ;;  %v651_v45 = vld [vmem:[#allocation3 + $0x358] sm:$0xff]  ;;  %v702_v48 = vld [vmem:[#allocation3 + $0x4f0] sm:$0xff]  ;;  %v2102_v55 = vpack.c.bf16 %v649_v39, %v646_v38 }
  0x42   :  { %1828 = vmatmul.mubr.msk.f32.gmra.mrb[16].mxu1 %vm96_vm3, %v50_v59  ;;  %2069 = vmatprep.subr.bf16.mxu0 %v2068_v5  ;;  %v641_v59 = vld [vmem:[#allocation3 + $0x308] sm:$0xff]  ;;  %v2873_v5 = vld [vmem:[%s3300_s2] sm:$0xf]  ;;  %v655_v57 = vld [vmem:[#allocation3 + $0x378] sm:$0xff] }
  0x43   :  { %1811 = vmatmul.mubr.msk.f32.gmra.mrb[18].mxu0 %vm96_vm3, %v51_v3  ;;  %437 = vmatprep.mubr.f32.mxu1 %v2633_v0  ;;  %v2096_v61 = vpack.c.bf16 %v644_v60, %v641_v59  ;;  %v656_v47 = vld [vmem:[#allocation3 + $0x380] sm:$0xff]  ;;  %v705_v49 = vld [vmem:[#allocation3 + $0x508] sm:$0xff]  ;;  %v659_v62 = vld [vmem:[#allocation3 + $0x398] sm:$0xff] }
  0x44   :  { %282 = vmatprep.mubr.f32.mxu0 %v2633_v0  ;;  %2193 = vmatprep.subr.bf16.mxu1 %v2192_v1  ;;  %v652_v56 = vld [vmem:[#allocation3 + $0x360] sm:$0xff]  ;;  %v2200_v63 = vpack.c.bf16 %v705_v49, %v702_v48  ;;  %v654_v1 = vld [vmem:[#allocation3 + $0x370] sm:$0xff]  ;;  %v661_v23 = vld [vmem:[#allocation3 + $0x3a8] sm:$0xff] }
  0x45   :  { %2071 = vmatpush1.bf16.msra.mxu0 %v2070_v11  ;;  %v658_v22 = vld [vmem:[#allocation3 + $0x390] sm:$0xff]  ;;  %v671_v49 = vld [vmem:[#allocation3 + $0x3f8] sm:$0xff] }
  0x46   :  { %1829 = vmatmul.mubr.msk.f32.gmra.mrb[18].mxu1 %vm96_vm3, %v51_v3  ;;  %2073 = vmatprep.subr.bf16.mxu0 %v2072_v12  ;;  %v2865_v3 = vshrl.u32 %v76_v2, 7 }
  0x47   :  { %1812 = vmatmul.mubr.msk.f32.gmra.mrb[20].mxu0 %vm96_vm3, %v52_v10  ;;  %443 = vmatprep.mubr.f32.mxu1 %v2633_v0 }
  0x48   :  { %288 = vmatprep.mubr.f32.mxu0 %v2633_v0  ;;  %v2868_v4 = vsub.s32 0, %v2865_v3  ;;  %v2876_v6 = vsub.s32 1, %v2865_v3 }
  0x49   :  { %2075 = vmatpush1.bf16.msra.mxu0 %v2074_v18 }
  0x4a   :  { %1830 = vmatmul.mubr.msk.f32.gmra.mrb[20].mxu1 %vm96_vm3, %v52_v10  ;;  %2077 = vmatprep.subr.bf16.mxu0 %v2076_v19  ;;  %v2880_v7 = vrot.slane %v2873_v5, %v2868_v4  ;;  %v2884_v8 = vrot.slane %v2873_v5, %v2876_v6 }
  0x4b   :  { %1813 = vmatmul.mubr.msk.f32.gmra.mrb[22].mxu0 %vm96_vm3, %v53_v17  ;;  %449 = vmatprep.mubr.f32.mxu1 %v2633_v0 }
  0x4c   :  { %294 = vmatprep.mubr.f32.mxu0 %v2633_v0 }
  0x4d   :  { %2079 = vmatpush1.bf16.msra.mxu0 %v2078_v25  ;;  %v642_v25 = vld [vmem:[#allocation3 + $0x310] sm:$0xff] }
  0x4e   :  { %1831 = vmatmul.mubr.msk.f32.gmra.mrb[22].mxu1 %vm96_vm3, %v53_v17  ;;  %2081 = vmatprep.subr.bf16.mxu0 %v2080_v26  ;;  %v645_v26 = vld [vmem:[#allocation3 + $0x328] sm:$0xff] }
  0x4f   :  { %1814 = vmatmul.mubr.msk.f32.gmra.mrb[24].mxu0 %vm96_vm3, %v54_v24  ;;  %455 = vmatprep.mubr.f32.mxu1 %v2633_v0  ;;  %v2194_v37 = vpack.c.bf16 %v645_v26, %v642_v25 }
  0x50   :  { %300 = vmatprep.mubr.f32.mxu0 %v2633_v0 }
  0x51   :  { %2083 = vmatpush1.bf16.msra.mxu0 %v2082_v32 }
  0x52   :  { %1832 = vmatmul.mubr.msk.f32.gmra.mrb[24].mxu1 %vm96_vm3, %v54_v24  ;;  %2085 = vmatprep.subr.bf16.mxu0 %v2084_v35 }
  0x53   :  { %1815 = vmatmul.mubr.msk.f32.gmra.mrb[26].mxu0 %vm96_vm3, %v55_v27  ;;  %461 = vmatprep.mubr.f32.mxu1 %v2633_v0 }
  0x54   :  { %306 = vmatprep.mubr.f32.mxu0 %v2633_v0 }
  0x55   :  { %2087 = vmatpush1.bf16.msra.mxu0 %v2086_v40 }
  0x56   :  { %1833 = vmatmul.mubr.msk.f32.gmra.mrb[26].mxu1 %vm96_vm3, %v55_v27  ;;  %v647_v27 = vld [vmem:[#allocation3 + $0x338] sm:$0xff] }
  0x57   :  { %1816 = vmatmul.mubr.msk.f32.gmra.mrb[28].mxu0 %vm96_vm3, %v56_v28  ;;  %467 = vmatprep.mubr.f32.mxu1 %v2633_v0 }
  0x58   :  { %312 = vmatprep.mubr.f32.mxu0 %v2633_v0 }
  0x5a   :  { %1834 = vmatmul.mubr.msk.f32.gmra.mrb[28].mxu1 %vm96_vm3, %v56_v28  ;;  %v650_v28 = vld [vmem:[#allocation3 + $0x350] sm:$0xff] }
  0x5b   :  { %1817 = vmatmul.mubr.msk.f32.gmra.mrb[30].mxu0 %vm96_vm3, %v57_v29  ;;  %473 = vmatprep.mubr.f32.mxu1 %v2633_v0  ;;  %v2088_v0 = vpack.c.bf16 %v632_v43, %v629_v42  ;;  %v2100_v42 = vpack.c.bf16 %v650_v28, %v647_v27  ;;  %v653_v43 = vld [vmem:[#allocation3 + $0x368] sm:$0xff] }
  0x5c   :  { %v665_v28 = vld [vmem:[#allocation3 + $0x3c8] sm:$0xff] }
  0x5d   :  { %2089 = vmatprep.subr.bf16.mxu0 %v2088_v0 }
  0x5e   :  { %1835 = vmatmul.mubr.msk.f32.gmra.mrb[30].mxu1 %vm96_vm3, %v57_v29  ;;  %2091 = vmatpush1.bf16.msra.mxu0 %v2090_v46  ;;  %v696_v29 = vld [vmem:[#allocation3 + $0x4c0] sm:$0xff] }
  0x5f   :  { %2093 = vmatprep.subr.bf16.mxu0 %v2092_v54  ;;  %v2196_v0 = vpack.c.bf16 %v699_v30, %v696_v29  ;;  %v660_v30 = vld [vmem:[#allocation3 + $0x3a0] sm:$0xff] }
  0x62   :  { %2095 = vmatpush1.bf16.msra.mxu0 %v2094_v58  ;;  %v2198_v58 = vpack.c.bf16 %v651_v45, %v648_v44  ;;  %v667_v44 = vld [vmem:[#allocation3 + $0x3d8] sm:$0xff] }
  0x63   :  { %2097 = vmatprep.subr.bf16.mxu0 %v2096_v61  ;;  %v2104_v61 = vpack.c.bf16 %v656_v47, %v653_v43  ;;  %v2110_v43 = vpack.c.bf16 %v661_v23, %v658_v22  ;;  %v675_v22 = vld [vmem:[#allocation3 + $0x418] sm:$0xff] }
  0xf2   :  { %v224_v9 = vpop.f32.mrb[0].mxu0 }
  0xf3   :  { %v225_v10 = vadd.f32 %v224_v9, %v2880_v7  ;;  %v226_v11 = vpop.f32.mrb[1].mxu0  ;;  %v657_v9 = vld [vmem:[#allocation3 + $0x388] sm:$0xff] }
  0xf4   :  { %v227_v12 = vadd.f32 %v226_v11, %v2884_v8  ;;  %v662_v11 = vld [vmem:[#allocation3 + $0x3b0] sm:$0xff] }
  0xf5   :  { %v2890_v17 = vpop.f32.mrb[0].mxu1  ;;  %v2108_v27 = vpack.c.bf16 %v662_v11, %v659_v62 }
  0xf6   :  { %2294 = vtanh.f32 %v227_v12  ;;  %v230_v13 = vpop.f32.mrb[2].mxu0  ;;  %v2892_v19 = vpop.f32.mrb[1].mxu1  ;;  %v708_v12 = vld [vmem:[#allocation3 + $0x520] sm:$0xff] }
  0xf7   :  { %2296 = vtanh.f32 %v225_v10  ;;  %v231_v14 = vadd.f32 %v230_v13, %v2880_v7  ;;  %v232_v15 = vpop.f32.mrb[3].mxu0  ;;  %v711_v13 = vld [vmem:[#allocation3 + $0x538] sm:$0xff] }
  0xf8   :  { %v233_v16 = vadd.f32 %v232_v15, %v2884_v8  ;;  %v2204_v29 = vpack.c.bf16 %v711_v13, %v708_v12 }
  0xf9   :  { %v2896_v31 = vpop.f32.mrb[2].mxu1 }
  0xfa   :  { %2298 = vtanh.f32 %v233_v16  ;;  %v236_v18 = vpop.f32.mrb[4].mxu0  ;;  %v2898_v33 = vpop.f32.mrb[3].mxu1 }
  0xfb   :  { %2300 = vtanh.f32 %v231_v14  ;;  %v237_v20 = vadd.f32 %v236_v18, %v2880_v7  ;;  %v238_v21 = vpop.f32.mrb[5].mxu0 }
  0xfc   :  { %v239_v24 = vadd.f32 %v238_v21, %v2884_v8  ;;  %v2106_v21 = vpack.c.bf16 %v655_v57, %v652_v56  ;;  %v674_v56 = vld [vmem:[#allocation3 + $0x410] sm:$0xff]  ;;  %v720_v57 = vld [vmem:[#allocation3 + $0x580] sm:$0xff] }
  0xfd   :  { %v2902_v50 = vpop.f32.mrb[4].mxu1 }
  0xfe   :  { %2302 = vtanh.f32 %v239_v24  ;;  %v242_v32 = vpop.f32.mrb[6].mxu0  ;;  %v2904_v52 = vpop.f32.mrb[5].mxu1  ;;  %v2202_v24 = vpack.c.bf16 %v657_v9, %v654_v1  ;;  %v670_v9 = vld [vmem:[#allocation3 + $0x3f0] sm:$0xff] }
  0xff   :  { %2304 = vtanh.f32 %v237_v20  ;;  %v243_v34 = vadd.f32 %v242_v32, %v2880_v7  ;;  %v244_v35 = vpop.f32.mrb[7].mxu0  ;;  %v663_v32 = vld [vmem:[#allocation3 + $0x3b8] sm:$0xff] }
 0x100   :  { %v2295_v40 = vpop.eup %2294  ;;  %v245_v41 = vadd.f32 %v244_v35, %v2884_v8  ;;  %v668_v35 = vld [vmem:[#allocation3 + $0x3e0] sm:$0xff]  ;;  %v2206_v45 = vpack.c.bf16 %v663_v32, %v660_v30 }
 0x101   :  { %v2297_v46 = vpop.eup %2296  ;;  %817 = vmatprep.mubr.f32.mxu0 %v2295_v40  ;;  %1139 = vmatprep.mubr.f32.mxu1 %v2295_v40  ;;  %v2908_v14 = vpop.f32.mrb[6].mxu1  ;;  %v2112_v48 = vpack.c.bf16 %v668_v35, %v665_v28  ;;  %v676_v35 = vld [vmem:[#allocation3 + $0x420] sm:$0xff] }
 0x102   :  { %2306 = vtanh.f32 %v245_v41  ;;  %v248_v51 = vpop.f32.mrb[8].mxu0  ;;  %818 = vmatmul.mubr.f32.vlgmr.msra.gmra.mrb[32].mxu0 %v2297_v46  ;;  %1140 = vmatmul.mubr.f32.vlgmr.msra.gmra.mrb[32].mxu1 %v2297_v46  ;;  %v2910_v16 = vpop.f32.mrb[7].mxu1 }
 0x103   :  { %2308 = vtanh.f32 %v243_v34  ;;  %v249_v53 = vadd.f32 %v248_v51, %v2880_v7  ;;  %2099 = vmatpush1.bf16.msra.mxu0 %v2098_v36  ;;  %2195 = vmatpush3.bf16.msra.mxu1 %v2194_v37  ;;  %v250_v54 = vpop.f32.mrb[9].mxu0  ;;  %v714_v36 = vld [vmem:[#allocation3 + $0x550] sm:$0xff]  ;;  %v717_v37 = vld [vmem:[#allocation3 + $0x568] sm:$0xff] }
 0x104   :  { %v2299_v59 = vpop.eup %2298  ;;  %v251_v60 = vadd.f32 %v250_v54, %v2884_v8  ;;  %2101 = vmatprep.subr.bf16.mxu0 %v2100_v42  ;;  %2197 = vmatprep.subr.bf16.mxu1 %v2196_v0  ;;  %v664_v0 = vld [vmem:[#allocation3 + $0x3c0] sm:$0xff]  ;;  %v2208_v51 = vpack.c.bf16 %v717_v37, %v714_v36  ;;  %v669_v54 = vld [vmem:[#allocation3 + $0x3e8] sm:$0xff]  ;;  %v679_v36 = vld [vmem:[#allocation3 + $0x438] sm:$0xff] }
 0x105   :  { %v2301_v10 = vpop.eup %2300  ;;  %823 = vmatprep.mubr.f32.mxu0 %v2299_v59  ;;  %1144 = vmatprep.mubr.f32.mxu1 %v2299_v59  ;;  %v2914_v38 = vpop.f32.mrb[8].mxu1  ;;  %v2114_v1 = vpack.c.bf16 %v667_v44, %v664_v0  ;;  %v678_v44 = vld [vmem:[#allocation3 + $0x430] sm:$0xff] }
 0x106   :  { %2310 = vtanh.f32 %v251_v60  ;;  %v254_v15 = vpop.f32.mrb[10].mxu0  ;;  %824 = vmatmul.mubr.f32.gmra.mrb[34].mxu0 %v2301_v10  ;;  %1145 = vmatmul.mubr.f32.gmra.mrb[34].mxu1 %v2301_v10  ;;  %v2916_v40 = vpop.f32.mrb[9].mxu1  ;;  %v673_v10 = vld [vmem:[#allocation3 + $0x408] sm:$0xff] }
 0x107   :  { %2312 = vtanh.f32 %v249_v53  ;;  %v255_v18 = vadd.f32 %v254_v15, %v2880_v7  ;;  %2103 = vmatpush1.bf16.msra.mxu0 %v2102_v55  ;;  %v256_v20 = vpop.f32.mrb[11].mxu0  ;;  %2199 = vmatpush3.bf16.msra.mxu1 %v2198_v58  ;;  %v666_v53 = vld [vmem:[#allocation3 + $0x3d0] sm:$0xff]  ;;  %v723_v58 = vld [vmem:[#allocation3 + $0x598] sm:$0xff]  ;;  %v2116_v15 = vpack.c.bf16 %v674_v56, %v671_v49 }
 0x108   :  { %v2303_v25 = vpop.eup %2302  ;;  %v257_v26 = vadd.f32 %v256_v20, %v2884_v8  ;;  %2105 = vmatprep.subr.bf16.mxu0 %v2104_v61  ;;  %2201 = vmatprep.subr.bf16.mxu1 %v2200_v63  ;;  %v2210_v11 = vpack.c.bf16 %v669_v54, %v666_v53  ;;  %v2212_v20 = vpack.c.bf16 %v723_v58, %v720_v57  ;;  %v735_v49 = vld [vmem:[#allocation3 + $0x5f8] sm:$0xff]  ;;  %v682_v58 = vld [vmem:[#allocation3 + $0x450] sm:$0xff] }
 0x109   :  { %v2305_v34 = vpop.eup %2304  ;;  %829 = vmatprep.mubr.f32.mxu0 %v2303_v25  ;;  %1149 = vmatprep.mubr.f32.mxu1 %v2303_v25  ;;  %v2920_v59 = vpop.f32.mrb[10].mxu1  ;;  %v726_v25 = vld [vmem:[#allocation3 + $0x5b0] sm:$0xff]  ;;  %v2122_v57 = vpack.c.bf16 %v679_v36, %v676_v35  ;;  %v691_v35 = vld [vmem:[#allocation3 + $0x498] sm:$0xff] }
 0x10a   :  { %2314 = vtanh.f32 %v257_v26  ;;  %v260_v39 = vpop.f32.mrb[12].mxu0  ;;  %830 = vmatmul.mubr.f32.gmra.mrb[36].mxu0 %v2305_v34  ;;  %1150 = vmatmul.mubr.f32.gmra.mrb[36].mxu1 %v2305_v34  ;;  %v2922_v61 = vpop.f32.mrb[11].mxu1  ;;  %v729_v26 = vld [vmem:[#allocation3 + $0x5c8] sm:$0xff]  ;;  %v2118_v34 = vpack.c.bf16 %v673_v10, %v670_v9 }
 0x10b   :  { %2316 = vtanh.f32 %v255_v18  ;;  %v261_v41 = vadd.f32 %v260_v39, %v2880_v7  ;;  %2107 = vmatpush1.bf16.msra.mxu0 %v2106_v21  ;;  %v262_v42 = vpop.f32.mrb[13].mxu0  ;;  %2203 = vmatpush3.bf16.msra.mxu1 %v2202_v24  ;;  %v677_v18 = vld [vmem:[#allocation3 + $0x428] sm:$0xff]  ;;  %v672_v21 = vld [vmem:[#allocation3 + $0x400] sm:$0xff]  ;;  %v2216_v0 = vpack.c.bf16 %v729_v26, %v726_v25 }
 0x10c   :  { %v2307_v46 = vpop.eup %2306  ;;  %v263_v47 = vadd.f32 %v262_v42, %v2884_v8  ;;  %2109 = vmatprep.subr.bf16.mxu0 %v2108_v27  ;;  %2205 = vmatprep.subr.bf16.mxu1 %v2204_v29  ;;  %v680_v24 = vld [vmem:[#allocation3 + $0x440] sm:$0xff]  ;;  %v2214_v37 = vpack.c.bf16 %v675_v22, %v672_v21  ;;  %v685_v9 = vld [vmem:[#allocation3 + $0x468] sm:$0xff] }
 0x10d   :  { %v2309_v55 = vpop.eup %2308  ;;  %835 = vmatprep.mubr.f32.mxu0 %v2307_v46  ;;  %1154 = vmatprep.mubr.f32.mxu1 %v2307_v46  ;;  %v2926_v27 = vpop.f32.mrb[12].mxu1  ;;  %v2120_v42 = vpack.c.bf16 %v680_v24, %v677_v18  ;;  %v692_v18 = vld [vmem:[#allocation3 + $0x4a0] sm:$0xff]  ;;  %v2126_v25 = vpack.c.bf16 %v685_v9, %v682_v58 }
 0x10e   :  { %2318 = vtanh.f32 %v263_v47  ;;  %v266_v60 = vpop.f32.mrb[14].mxu0  ;;  %836 = vmatmul.mubr.f32.gmra.mrb[38].mxu0 %v2309_v55  ;;  %1155 = vmatmul.mubr.f32.gmra.mrb[38].mxu1 %v2309_v55  ;;  %v2928_v29 = vpop.f32.mrb[13].mxu1  ;;  %v686_v47 = vld [vmem:[#allocation3 + $0x470] sm:$0xff] }
 0x10f   :  { %2320 = vtanh.f32 %v261_v41  ;;  %v267_v62 = vadd.f32 %v266_v60, %v2880_v7  ;;  %2111 = vmatpush1.bf16.msra.mxu0 %v2110_v43  ;;  %v268_v63 = vpop.f32.mrb[15].mxu0  ;;  %2207 = vmatpush3.bf16.msra.mxu1 %v2206_v45  ;;  %v683_v43 = vld [vmem:[#allocation3 + $0x458] sm:$0xff]  ;;  %v681_v45 = vld [vmem:[#allocation3 + $0x448] sm:$0xff] }
 0x110   :  { %v2311_v12 = vpop.eup %2310  ;;  %v269_v13 = vadd.f32 %v268_v63, %v2884_v8  ;;  %2113 = vmatprep.subr.bf16.mxu0 %v2112_v48  ;;  %2209 = vmatprep.subr.bf16.mxu1 %v2208_v51  ;;  %v732_v48 = vld [vmem:[#allocation3 + $0x5e0] sm:$0xff]  ;;  %v2218_v60 = vpack.c.bf16 %v681_v45, %v678_v44 }
 0x111   :  { %v2313_v23 = vpop.eup %2312  ;;  %841 = vmatprep.mubr.f32.mxu0 %v2311_v12  ;;  %1159 = vmatprep.mubr.f32.mxu1 %v2311_v12  ;;  %v2932_v51 = vpop.f32.mrb[14].mxu1  ;;  %v2220_v10 = vpack.c.bf16 %v735_v49, %v732_v48  ;;  %v687_v12 = vld [vmem:[#allocation3 + $0x478] sm:$0xff]  ;;  %v694_v49 = vld [vmem:[#allocation3 + $0x4b0] sm:$0xff] }
 0x112   :  { %2322 = vtanh.f32 %v269_v13  ;;  %v272_v28 = vpop.f32.mrb[16].mxu0  ;;  %842 = vmatmul.mubr.f32.gmra.mrb[40].mxu0 %v2313_v23  ;;  %1160 = vmatmul.mubr.f32.gmra.mrb[40].mxu1 %v2313_v23  ;;  %v2934_v54 = vpop.f32.mrb[15].mxu1 }
 0x113   :  { %2324 = vtanh.f32 %v267_v62  ;;  %v273_v30 = vadd.f32 %v272_v28, %v2880_v7  ;;  %2115 = vmatpush1.bf16.msra.mxu0 %v2114_v1  ;;  %v274_v32 = vpop.f32.mrb[17].mxu0  ;;  %2211 = vmatpush3.bf16.msra.mxu1 %v2210_v11  ;;  %v2124_v1 = vpack.c.bf16 %v686_v47, %v683_v43  ;;  %v684_v11 = vld [vmem:[#allocation3 + $0x460] sm:$0xff] }
 0x114   :  { %v2315_v39 = vpop.eup %2314  ;;  %v275_v41 = vadd.f32 %v274_v32, %v2884_v8  ;;  %2117 = vmatprep.subr.bf16.mxu0 %v2116_v15  ;;  %2213 = vmatprep.subr.bf16.mxu1 %v2212_v20  ;;  %v689_v15 = vld [vmem:[#allocation3 + $0x488] sm:$0xff]  ;;  %v2222_v26 = vpack.c.bf16 %v687_v12, %v684_v11 }
 0x115   :  { %v2317_v46 = vpop.eup %2316  ;;  %847 = vmatprep.mubr.f32.mxu0 %v2315_v39  ;;  %1164 = vmatprep.mubr.f32.mxu1 %v2315_v39  ;;  %v2938_v20 = vpop.f32.mrb[16].mxu1  ;;  %v2128_v32 = vpack.c.bf16 %v692_v18, %v689_v15  ;;  %v698_v39 = vld [vmem:[#allocation3 + $0x4d0] sm:$0xff]  ;;  %v703_v15 = vld [vmem:[#allocation3 + $0x4f8] sm:$0xff] }
 0x116   :  { %2326 = vtanh.f32 %v275_v41  ;;  %v278_v53 = vpop.f32.mrb[18].mxu0  ;;  %848 = vmatmul.mubr.f32.gmra.mrb[42].mxu0 %v2317_v46  ;;  %1165 = vmatmul.mubr.f32.gmra.mrb[42].mxu1 %v2317_v46  ;;  %v2940_v22 = vpop.f32.mrb[17].mxu1 }
 0x117   :  { %2328 = vtanh.f32 %v273_v30  ;;  %v279_v55 = vadd.f32 %v278_v53, %v2880_v7  ;;  %2119 = vmatpush1.bf16.msra.mxu0 %v2118_v34  ;;  %v280_v56 = vpop.f32.mrb[19].mxu0  ;;  %2215 = vmatpush3.bf16.msra.mxu1 %v2214_v37  ;;  %v688_v34 = vld [vmem:[#allocation3 + $0x480] sm:$0xff]  ;;  %v695_v37 = vld [vmem:[#allocation3 + $0x4b8] sm:$0xff]  ;;  %v697_v53 = vld [vmem:[#allocation3 + $0x4c8] sm:$0xff] }
 0x118   :  { %v2319_v62 = vpop.eup %2318  ;;  %v281_v63 = vadd.f32 %v280_v56, %v2884_v8  ;;  %2121 = vmatprep.subr.bf16.mxu0 %v2120_v42  ;;  %2217 = vmatprep.subr.bf16.mxu1 %v2216_v0  ;;  %v2130_v45 = vpack.c.bf16 %v691_v35, %v688_v34  ;;  %v2132_v48 = vpack.c.bf16 %v698_v39, %v695_v37  ;;  %v701_v56 = vld [vmem:[#allocation3 + $0x4e8] sm:$0xff]  ;;  %v706_v39 = vld [vmem:[#allocation3 + $0x510] sm:$0xff] }
 0x119   :  { %v2321_v13 = vpop.eup %2320  ;;  %853 = vmatprep.mubr.f32.mxu0 %v2319_v62  ;;  %1169 = vmatprep.mubr.f32.mxu1 %v2319_v62  ;;  %v2944_v41 = vpop.f32.mrb[18].mxu1  ;;  %v2134_v9 = vpack.c.bf16 %v697_v53, %v694_v49 }
 0x11a   :  { %2330 = vtanh.f32 %v281_v63  ;;  %v284_v21 = vpop.f32.mrb[20].mxu0  ;;  %854 = vmatmul.mubr.f32.gmra.mrb[44].mxu0 %v2321_v13  ;;  %1170 = vmatmul.mubr.f32.gmra.mrb[44].mxu1 %v2321_v13  ;;  %v2946_v43 = vpop.f32.mrb[19].mxu1  ;;  %v700_v13 = vld [vmem:[#allocation3 + $0x4e0] sm:$0xff] }
 0x11b   :  { %2332 = vtanh.f32 %v279_v55  ;;  %v285_v23 = vadd.f32 %v284_v21, %v2880_v7  ;;  %2123 = vmatpush1.bf16.msra.mxu0 %v2122_v57  ;;  %v286_v24 = vpop.f32.mrb[21].mxu0  ;;  %2219 = vmatpush3.bf16.msra.mxu1 %v2218_v60  ;;  %v704_v57 = vld [vmem:[#allocation3 + $0x500] sm:$0xff]  ;;  %v707_v21 = vld [vmem:[#allocation3 + $0x518] sm:$0xff]  ;;  %v2138_v34 = vpack.c.bf16 %v703_v15, %v700_v13  ;;  %v722_v15 = vld [vmem:[#allocation3 + $0x590] sm:$0xff] }
 0x11c   :  { %v2323_v28 = vpop.eup %2322  ;;  %v287_v30 = vadd.f32 %v286_v24, %v2884_v8  ;;  %2125 = vmatprep.subr.bf16.mxu0 %v2124_v1  ;;  %2221 = vmatprep.subr.bf16.mxu1 %v2220_v10  ;;  %v2136_v12 = vpack.c.bf16 %v704_v57, %v701_v56  ;;  %v90_v24 = vsub.s32 3, %v2865_v3  ;;  %v2972_v57 = vsub.s32 2, %v2865_v3  ;;  %v719_v13 = vld [vmem:[#allocation3 + $0x578] sm:$0xff] }
 0x11d   :  { %v2325_v36 = vpop.eup %2324  ;;  %859 = vmatprep.mubr.f32.mxu0 %v2323_v28  ;;  %1174 = vmatprep.mubr.f32.mxu1 %v2323_v28  ;;  %v2950_v58 = vpop.f32.mrb[20].mxu1 }
 0x11e   :  { %2334 = vtanh.f32 %v287_v30  ;;  %v290_v42 = vpop.f32.mrb[22].mxu0  ;;  %860 = vmatmul.mubr.f32.gmra.mrb[46].mxu0 %v2325_v36  ;;  %1175 = vmatmul.mubr.f32.gmra.mrb[46].mxu1 %v2325_v36  ;;  %v2952_v62 = vpop.f32.mrb[21].mxu1 }
 0x11f   :  { %2336 = vtanh.f32 %v285_v23  ;;  %v291_v0 = vadd.f32 %v290_v42, %v2880_v7  ;;  %2127 = vmatpush1.bf16.msra.mxu0 %v2126_v25  ;;  %v292_v44 = vpop.f32.mrb[23].mxu0  ;;  %2223 = vmatpush3.bf16.msra.mxu1 %v2222_v26  ;;  %v710_v23 = vld [vmem:[#allocation3 + $0x530] sm:$0xff]  ;;  %v709_v42 = vld [vmem:[#allocation3 + $0x528] sm:$0xff] }
 0x120   :  { %v2327_v46 = vpop.eup %2326  ;;  %v293_v47 = vadd.f32 %v292_v44, %v2884_v8  ;;  %2129 = vmatprep.subr.bf16.mxu0 %v2128_v32  ;;  %v2140_v37 = vpack.c.bf16 %v710_v23, %v707_v21  ;;  %v713_v44 = vld [vmem:[#allocation3 + $0x548] sm:$0xff]  ;;  %v2142_v56 = vpack.c.bf16 %v709_v42, %v706_v39 }
 0x121   :  { %v2329_v55 = vpop.eup %2328  ;;  %865 = vmatprep.mubr.f32.mxu0 %v2327_v46  ;;  %1179 = vmatprep.mubr.f32.mxu1 %v2327_v46  ;;  %v2957_v25 = vpop.f32.mrb[22].mxu1  ;;  %v2964_v46 = vrot.slane %v2873_v5, %v90_v24  ;;  %v725_v42 = vld [vmem:[#allocation3 + $0x5a8] sm:$0xff] }
 0x122   :  { %2338 = vtanh.f32 %v293_v47  ;;  %v296_v60 = vpop.f32.mrb[24].mxu0  ;;  %866 = vmatmul.mubr.f32.gmra.mrb[48].mxu0 %v2329_v55  ;;  %1180 = vmatmul.mubr.f32.gmra.mrb[48].mxu1 %v2329_v55  ;;  %v2959_v28 = vpop.f32.mrb[23].mxu1 }
 0x123   :  { %2340 = vtanh.f32 %v291_v0  ;;  %v297_v63 = vadd.f32 %v296_v60, %v2880_v7  ;;  %2131 = vmatpush1.bf16.msra.mxu0 %v2130_v45  ;;  %v298_v1 = vpop.f32.mrb[25].mxu0  ;;  %v716_v45 = vld [vmem:[#allocation3 + $0x560] sm:$0xff] }
 0x124   :  { %v2331_v10 = vpop.eup %2330  ;;  %v299_v11 = vadd.f32 %v298_v1, %v2884_v8  ;;  %2133 = vmatprep.subr.bf16.mxu0 %v2132_v48  ;;  %v2144_v1 = vpack.c.bf16 %v716_v45, %v713_v44 }
 0x125   :  { %v2333_v18 = vpop.eup %2332  ;;  %871 = vmatprep.mubr.f32.mxu0 %v2331_v10  ;;  %1184 = vmatprep.mubr.f32.mxu1 %v2331_v10  ;;  %v2966_v47 = vpop.f32.mrb[24].mxu1  ;;  %v715_v10 = vld [vmem:[#allocation3 + $0x558] sm:$0xff] }
 0x126   :  { %2342 = vtanh.f32 %v299_v11  ;;  %v302_v26 = vpop.f32.mrb[26].mxu0  ;;  %872 = vmatmul.mubr.f32.gmra.mrb[50].mxu0 %v2333_v18  ;;  %1185 = vmatmul.mubr.f32.gmra.mrb[50].mxu1 %v2333_v18  ;;  %v2968_v49 = vpop.f32.mrb[25].mxu1 }
 0x127   :  { %2344 = vtanh.f32 %v297_v63  ;;  %v303_v30 = vadd.f32 %v302_v26, %v2880_v7  ;;  %2135 = vmatpush1.bf16.msra.mxu0 %v2134_v9  ;;  %v304_v32 = vpop.f32.mrb[27].mxu0  ;;  %v712_v9 = vld [vmem:[#allocation3 + $0x540] sm:$0xff] }
 0x128   :  { %v2335_v35 = vpop.eup %2334  ;;  %v305_v36 = vadd.f32 %v304_v32, %v2884_v8  ;;  %2137 = vmatprep.subr.bf16.mxu0 %v2136_v12  ;;  %v388_v12 = vadd.f32 %v2892_v19, %v2964_v46  ;;  %v2146_v19 = vpack.c.bf16 %v715_v10, %v712_v9 }
 0x129   :  { %v2337_v0 = vpop.eup %2336  ;;  %877 = vmatprep.mubr.f32.mxu0 %v2335_v35  ;;  %1189 = vmatprep.mubr.f32.mxu1 %v2335_v35  ;;  %v2977_v18 = vpop.f32.mrb[26].mxu1  ;;  %v2148_v35 = vpack.c.bf16 %v722_v15, %v719_v13  ;;  %v730_v15 = vld [vmem:[#allocation3 + $0x5d0] sm:$0xff] }
 0x12a   :  { %2346 = vtanh.f32 %v305_v36  ;;  %v308_v48 = vpop.f32.mrb[28].mxu0  ;;  %878 = vmatmul.mubr.f32.gmra.mrb[52].mxu0 %v2337_v0  ;;  %1190 = vmatmul.mubr.f32.gmra.mrb[52].mxu1 %v2337_v0  ;;  %v2979_v23 = vpop.f32.mrb[27].mxu1  ;;  %v718_v36 = vld [vmem:[#allocation3 + $0x570] sm:$0xff] }
 0x12b   :  { %2348 = vtanh.f32 %v303_v30  ;;  %v309_v53 = vadd.f32 %v308_v48, %v2880_v7  ;;  %2139 = vmatpush1.bf16.msra.mxu0 %v2138_v34  ;;  %v310_v55 = vpop.f32.mrb[29].mxu0  ;;  %v2984_v30 = vrot.slane %v2873_v5, %v2972_v57  ;;  %v394_v5 = vadd.f32 %v2898_v33, %v2964_v46 }
 0x12c   :  { %v2339_v60 = vpop.eup %2338  ;;  %v311_v63 = vadd.f32 %v310_v55, %v2884_v8  ;;  %2141 = vmatprep.subr.bf16.mxu0 %v2140_v37  ;;  %v721_v37 = vld [vmem:[#allocation3 + $0x588] sm:$0xff]  ;;  %v724_v55 = vld [vmem:[#allocation3 + $0x5a0] sm:$0xff] }
 0x12d   :  { %v2341_v11 = vpop.eup %2340  ;;  %883 = vmatprep.mubr.f32.mxu0 %v2339_v60  ;;  %1194 = vmatprep.mubr.f32.mxu1 %v2339_v60  ;;  %v2987_v0 = vpop.f32.mrb[28].mxu1  ;;  %v2150_v45 = vpack.c.bf16 %v721_v37, %v718_v36  ;;  %v392_v10 = vadd.f32 %v2896_v31, %v2984_v30  ;;  %v398_v31 = vadd.f32 %v2902_v50, %v2984_v30 }
 0x12e   :  { %2350 = vtanh.f32 %v311_v63  ;;  %v314_v21 = vpop.f32.mrb[30].mxu0  ;;  %884 = vmatmul.mubr.f32.gmra.mrb[54].mxu0 %v2341_v11  ;;  %1195 = vmatmul.mubr.f32.gmra.mrb[54].mxu1 %v2341_v11  ;;  %v2991_v44 = vpop.f32.mrb[29].mxu1  ;;  %v731_v63 = vld [vmem:[#allocation3 + $0x5d8] sm:$0xff]  ;;  %v418_v37 = vadd.f32 %v2922_v61, %v2964_v46 }
 0x12f   :  { %2352 = vtanh.f32 %v309_v53  ;;  %v315_v24 = vadd.f32 %v314_v21, %v2880_v7  ;;  %2143 = vmatpush1.bf16.msra.mxu0 %v2142_v56  ;;  %v316_v26 = vpop.f32.mrb[31].mxu0  ;;  %v728_v7 = vld [vmem:[#allocation3 + $0x5c0] sm:$0xff]  ;;  %v727_v56 = vld [vmem:[#allocation3 + $0x5b8] sm:$0xff]  ;;  %v733_v21 = vld [vmem:[#allocation3 + $0x5e8] sm:$0xff] }
 0x130   :  { %v2343_v32 = vpop.eup %2342  ;;  %v317_v34 = vadd.f32 %v316_v26, %v2884_v8  ;;  %2145 = vmatprep.subr.bf16.mxu0 %v2144_v1  ;;  %2354 = vtanh.f32 %v388_v12  ;;  %v386_v8 = vadd.f32 %v2890_v17, %v2984_v30  ;;  %v2152_v53 = vpack.c.bf16 %v728_v7, %v725_v42  ;;  %v734_v1 = vld [vmem:[#allocation3 + $0x5f0] sm:$0xff] }
 0x131   :  { %v2345_v39 = vpop.eup %2344  ;;  %889 = vmatprep.mubr.f32.mxu0 %v2343_v32  ;;  %1199 = vmatprep.mubr.f32.mxu1 %v2343_v32  ;;  %v2995_v9 = vpop.f32.mrb[30].mxu1  ;;  %v400_v17 = vadd.f32 %v2904_v52, %v2964_v46  ;;  %v2154_v11 = vpack.c.bf16 %v727_v56, %v724_v55  ;;  %v2156_v13 = vpack.c.bf16 %v734_v1, %v731_v63 }
 0x132   :  { %2356 = vtanh.f32 %v317_v34  ;;  %890 = vmatmul.mubr.f32.gmra.mrb[56].mxu0 %v2345_v39  ;;  %1200 = vmatmul.mubr.f32.gmra.mrb[56].mxu1 %v2345_v39  ;;  %v2999_v33 = vpop.f32.mrb[31].mxu1  ;;  %v406_v52 = vadd.f32 %v2910_v16, %v2964_v46  ;;  %v404_v16 = vadd.f32 %v2908_v14, %v2984_v30  ;;  %v410_v39 = vadd.f32 %v2914_v38, %v2984_v30 }
 0x133   :  { %2358 = vtanh.f32 %v315_v24  ;;  %2147 = vmatpush1.bf16.msra.mxu0 %v2146_v19  ;;  %v2158_v19 = vpack.c.bf16 %v733_v21, %v730_v15  ;;  %v424_v14 = vadd.f32 %v2928_v29, %v2964_v46  ;;  %v416_v7 = vadd.f32 %v2920_v59, %v2984_v30 }
 0x134   :  { %v2347_v48 = vpop.eup %2346  ;;  %2149 = vmatprep.subr.bf16.mxu0 %v2148_v35  ;;  %2360 = vtanh.f32 %v394_v5  ;;  %v412_v35 = vadd.f32 %v2916_v40, %v2964_v46  ;;  %v430_v38 = vadd.f32 %v2934_v54, %v2964_v46  ;;  %v436_v59 = vadd.f32 %v2940_v22, %v2964_v46 }
 0x135   :  { %v2349_v60 = vpop.eup %2348  ;;  %895 = vmatprep.mubr.f32.mxu0 %v2347_v48  ;;  %1204 = vmatprep.mubr.f32.mxu1 %v2347_v48  ;;  %2362 = vtanh.f32 %v386_v8  ;;  %v422_v8 = vadd.f32 %v2926_v27, %v2984_v30  ;;  %v428_v48 = vadd.f32 %v2932_v51, %v2984_v30  ;;  %v442_v27 = vadd.f32 %v2946_v43, %v2964_v46 }
 0x136   :  { %896 = vmatmul.mubr.f32.gmra.mrb[58].mxu0 %v2349_v60  ;;  %1205 = vmatmul.mubr.f32.gmra.mrb[58].mxu1 %v2349_v60  ;;  %2364 = vtanh.f32 %v400_v17  ;;  %v434_v55 = vadd.f32 %v2938_v20, %v2984_v30  ;;  %v448_v51 = vadd.f32 %v2952_v62, %v2964_v46  ;;  %v440_v60 = vadd.f32 %v2944_v41, %v2984_v30 }
 0x137   :  { %2151 = vmatpush1.bf16.msra.mxu0 %v2150_v45  ;;  %2366 = vtanh.f32 %v392_v10  ;;  %v454_v20 = vadd.f32 %v2959_v28, %v2964_v46  ;;  %v446_v1 = vadd.f32 %v2950_v58, %v2984_v30  ;;  %v460_v41 = vadd.f32 %v2968_v49, %v2964_v46 }
 0x138   :  { %v2351_v12 = vpop.eup %2350  ;;  %2153 = vmatprep.subr.bf16.mxu0 %v2152_v53  ;;  %2368 = vtanh.f32 %v406_v52  ;;  %v452_v10 = vadd.f32 %v2957_v25, %v2984_v30  ;;  %v466_v58 = vadd.f32 %v2979_v23, %v2964_v46  ;;  %v472_v25 = vadd.f32 %v2991_v44, %v2964_v46 }
 0x139   :  { %v2353_v24 = vpop.eup %2352  ;;  %901 = vmatprep.mubr.f32.mxu0 %v2351_v12  ;;  %1209 = vmatprep.mubr.f32.mxu1 %v2351_v12  ;;  %2370 = vtanh.f32 %v398_v31  ;;  %v458_v12 = vadd.f32 %v2966_v47, %v2984_v30  ;;  %v464_v15 = vadd.f32 %v2977_v18, %v2984_v30  ;;  %v478_v47 = vadd.f32 %v2999_v33, %v2964_v46 }
 0x13a   :  { %902 = vmatmul.mubr.f32.gmra.mrb[60].mxu0 %v2353_v24  ;;  %1210 = vmatmul.mubr.f32.gmra.mrb[60].mxu1 %v2353_v24  ;;  %v2355_v26 = vpop.eup %2354  ;;  %2372 = vtanh.f32 %v412_v35  ;;  %v470_v24 = vadd.f32 %v2987_v0, %v2984_v30  ;;  %v476_v18 = vadd.f32 %v2995_v9, %v2984_v30 }
 0x13b   :  { %2155 = vmatpush1.bf16.msra.mxu0 %v2154_v11  ;;  %2374 = vtanh.f32 %v404_v16 }
 0x13c   :  { %v2357_v32 = vpop.eup %2356  ;;  %2157 = vmatprep.subr.bf16.mxu0 %v2156_v13  ;;  %2376 = vtanh.f32 %v418_v37 }
 0x13d   :  { %v2359_v34 = vpop.eup %2358  ;;  %907 = vmatprep.mubr.f32.mxu0 %v2357_v32  ;;  %1214 = vmatprep.mubr.f32.mxu1 %v2357_v32  ;;  %2378 = vtanh.f32 %v410_v39 }
 0x13e   :  { %908 = vmatmul.mubr.f32.gmra.mrb[62].mxu0 %v2359_v34  ;;  %1215 = vmatmul.mubr.f32.gmra.mrb[62].mxu1 %v2359_v34  ;;  %v2361_v50 = vpop.eup %2360  ;;  %2380 = vtanh.f32 %v424_v14 }
 0x13f   :  { %2159 = vmatpush1.bf16.msra.mxu0 %v2158_v19  ;;  %978 = vmatprep.mubr.f32.mxu0 %v2355_v26  ;;  %v2363_v36 = vpop.eup %2362  ;;  %2382 = vtanh.f32 %v416_v7 }
 0x140   :  { %1284 = vmatprep.mubr.f32.mxu1 %v2355_v26  ;;  %v2365_v40 = vpop.eup %2364  ;;  %2384 = vtanh.f32 %v430_v38 }
 0x141   :  { %v2367_v42 = vpop.eup %2366  ;;  %2386 = vtanh.f32 %v422_v8 }
 0x142   :  { %979 = vmatmul.mubr.f32.vlgmr.msra.gmra.mrb[32].mxu0 %v2363_v36  ;;  %1285 = vmatmul.mubr.f32.vlgmr.msra.gmra.mrb[64].mxu1 %v2363_v36  ;;  %v2369_v61 = vpop.eup %2368  ;;  %2388 = vtanh.f32 %v436_v59 }
 0x143   :  { %984 = vmatprep.mubr.f32.mxu0 %v2361_v50  ;;  %1289 = vmatprep.mubr.f32.mxu1 %v2361_v50  ;;  %v2371_v5 = vpop.eup %2370  ;;  %2390 = vtanh.f32 %v428_v48 }
 0x144   :  { %v2373_v29 = vpop.eup %2372  ;;  %2392 = vtanh.f32 %v442_v27 }
 0x145   :  { %v2375_v45 = vpop.eup %2374  ;;  %2394 = vtanh.f32 %v434_v55 }
 0x146   :  { %985 = vmatmul.mubr.f32.gmra.mrb[34].mxu0 %v2367_v42  ;;  %1290 = vmatmul.mubr.f32.gmra.mrb[66].mxu1 %v2367_v42  ;;  %v2377_v54 = vpop.eup %2376  ;;  %2396 = vtanh.f32 %v448_v51 }
 0x147   :  { %990 = vmatprep.mubr.f32.mxu0 %v2365_v40  ;;  %1294 = vmatprep.mubr.f32.mxu1 %v2365_v40  ;;  %v2379_v53 = vpop.eup %2378  ;;  %2398 = vtanh.f32 %v440_v60 }
 0x148   :  { %v2381_v22 = vpop.eup %2380  ;;  %2400 = vtanh.f32 %v454_v20 }
 0x149   :  { %v2383_v56 = vpop.eup %2382  ;;  %2402 = vtanh.f32 %v446_v1 }
 0x14a   :  { %991 = vmatmul.mubr.f32.gmra.mrb[36].mxu0 %v2371_v5  ;;  %1295 = vmatmul.mubr.f32.gmra.mrb[68].mxu1 %v2371_v5  ;;  %v2385_v43 = vpop.eup %2384  ;;  %2404 = vtanh.f32 %v460_v41 }
 0x14b   :  { %996 = vmatprep.mubr.f32.mxu0 %v2369_v61  ;;  %1299 = vmatprep.mubr.f32.mxu1 %v2369_v61  ;;  %v2387_v63 = vpop.eup %2386  ;;  %2406 = vtanh.f32 %v452_v10 }
 0x14c   :  { %v2389_v62 = vpop.eup %2388  ;;  %2408 = vtanh.f32 %v466_v58 }
 0x14d   :  { %v2391_v17 = vpop.eup %2390  ;;  %2410 = vtanh.f32 %v458_v12 }
 0x14e   :  { %997 = vmatmul.mubr.f32.gmra.mrb[38].mxu0 %v2375_v45  ;;  %1300 = vmatmul.mubr.f32.gmra.mrb[70].mxu1 %v2375_v45  ;;  %v2393_v28 = vpop.eup %2392  ;;  %2412 = vtanh.f32 %v472_v25 }
 0x14f   :  { %1002 = vmatprep.mubr.f32.mxu0 %v2373_v29  ;;  %1304 = vmatprep.mubr.f32.mxu1 %v2373_v29  ;;  %v2395_v11 = vpop.eup %2394  ;;  %2414 = vtanh.f32 %v464_v15 }
 0x150   :  { %v2397_v49 = vpop.eup %2396  ;;  %2416 = vtanh.f32 %v478_v47 }
 0x151   :  { %v2399_v13 = vpop.eup %2398  ;;  %2418 = vtanh.f32 %v470_v24 }
 0x152   :  { %1003 = vmatmul.mubr.f32.gmra.mrb[40].mxu0 %v2379_v53  ;;  %1305 = vmatmul.mubr.f32.gmra.mrb[72].mxu1 %v2379_v53  ;;  %v2401_v23 = vpop.eup %2400  ;;  %2420 = vtanh.f32 %v476_v18 }
 0x153   :  { %1008 = vmatprep.mubr.f32.mxu0 %v2377_v54  ;;  %1309 = vmatprep.mubr.f32.mxu1 %v2377_v54  ;;  %v2403_v21 = vpop.eup %2402 }
 0x154   :  { %v2405_v44 = vpop.eup %2404 }
 0x155   :  { %v2407_v52 = vpop.eup %2406 }
 0x156   :  { %1009 = vmatmul.mubr.f32.gmra.mrb[42].mxu0 %v2383_v56  ;;  %1310 = vmatmul.mubr.f32.gmra.mrb[74].mxu1 %v2383_v56  ;;  %v2409_v26 = vpop.eup %2408 }
 0x157   :  { %1014 = vmatprep.mubr.f32.mxu0 %v2381_v22  ;;  %1314 = vmatprep.mubr.f32.mxu1 %v2381_v22  ;;  %v2411_v31 = vpop.eup %2410 }
 0x158   :  { %v2413_v46 = vpop.eup %2412 }
 0x159   :  { %v2415_v0 = vpop.eup %2414 }
 0x15a   :  { %1015 = vmatmul.mubr.f32.gmra.mrb[44].mxu0 %v2387_v63  ;;  %1315 = vmatmul.mubr.f32.gmra.mrb[76].mxu1 %v2387_v63  ;;  %v2417_v33 = vpop.eup %2416 }
 0x15b   :  { %1020 = vmatprep.mubr.f32.mxu0 %v2385_v43  ;;  %1319 = vmatprep.mubr.f32.mxu1 %v2385_v43  ;;  %v2419_v19 = vpop.eup %2418 }
 0x15c   :  { %v2421_v30 = vpop.eup %2420 }
 0x15e   :  { %1021 = vmatmul.mubr.f32.gmra.mrb[46].mxu0 %v2391_v17  ;;  %1320 = vmatmul.mubr.f32.gmra.mrb[78].mxu1 %v2391_v17 }
 0x15f   :  { %1026 = vmatprep.mubr.f32.mxu0 %v2389_v62  ;;  %1324 = vmatprep.mubr.f32.mxu1 %v2389_v62 }
 0x162   :  { %1027 = vmatmul.mubr.f32.gmra.mrb[48].mxu0 %v2395_v11  ;;  %1325 = vmatmul.mubr.f32.gmra.mrb[80].mxu1 %v2395_v11 }
 0x163   :  { %1032 = vmatprep.mubr.f32.mxu0 %v2393_v28  ;;  %1329 = vmatprep.mubr.f32.mxu1 %v2393_v28 }
 0x166   :  { %1033 = vmatmul.mubr.f32.gmra.mrb[50].mxu0 %v2399_v13  ;;  %1330 = vmatmul.mubr.f32.gmra.mrb[82].mxu1 %v2399_v13 }
 0x167   :  { %1038 = vmatprep.mubr.f32.mxu0 %v2397_v49  ;;  %1334 = vmatprep.mubr.f32.mxu1 %v2397_v49 }
 0x16a   :  { %1039 = vmatmul.mubr.f32.gmra.mrb[52].mxu0 %v2403_v21  ;;  %1335 = vmatmul.mubr.f32.gmra.mrb[84].mxu1 %v2403_v21 }
 0x16b   :  { %1044 = vmatprep.mubr.f32.mxu0 %v2401_v23  ;;  %1339 = vmatprep.mubr.f32.mxu1 %v2401_v23  ;;  %v736_v23 = vld [vmem:[%s3302_s4] sm:$0x7] }
 0x16c   :  { %v3089_v24 = vrot.slane %v736_v23, %v2868_v4  ;;  %v3097_v18 = vrot.slane %v736_v23, %v2876_v6 }
 0x16e   :  { %1045 = vmatmul.mubr.f32.gmra.mrb[54].mxu0 %v2407_v52  ;;  %1340 = vmatmul.mubr.f32.gmra.mrb[86].mxu1 %v2407_v52 }
 0x16f   :  { %1050 = vmatprep.mubr.f32.mxu0 %v2405_v44  ;;  %1344 = vmatprep.mubr.f32.mxu1 %v2405_v44  ;;  %v3092_v44 = vrot.slane %v736_v23, %v2972_v57 }
 0x172   :  { %1051 = vmatmul.mubr.f32.gmra.mrb[56].mxu0 %v2411_v31  ;;  %1345 = vmatmul.mubr.f32.gmra.mrb[88].mxu1 %v2411_v31 }
 0x173   :  { %1056 = vmatprep.mubr.f32.mxu0 %v2409_v26  ;;  %1349 = vmatprep.mubr.f32.mxu1 %v2409_v26 }
 0x176   :  { %1057 = vmatmul.mubr.f32.gmra.mrb[58].mxu0 %v2415_v0  ;;  %1350 = vmatmul.mubr.f32.gmra.mrb[90].mxu1 %v2415_v0 }
 0x177   :  { %1062 = vmatprep.mubr.f32.mxu0 %v2413_v46  ;;  %1354 = vmatprep.mubr.f32.mxu1 %v2413_v46 }
 0x17a   :  { %1063 = vmatmul.mubr.f32.gmra.mrb[60].mxu0 %v2419_v19  ;;  %1355 = vmatmul.mubr.f32.gmra.mrb[92].mxu1 %v2419_v19 }
 0x17b   :  { %1068 = vmatprep.mubr.f32.mxu0 %v2417_v33  ;;  %1359 = vmatprep.mubr.f32.mxu1 %v2417_v33 }
 0x17e   :  { %1069 = vmatmul.mubr.f32.gmra.mrb[62].mxu0 %v2421_v30  ;;  %1360 = vmatmul.mubr.f32.gmra.mrb[94].mxu1 %v2421_v30 }
 0x1d5   :  { %v1884_v9 = vpop.f32.mrb[32].mxu1 }
 0x1d6   :  { %v1885_v32 = vpop.f32.mrb[33].mxu1 }
 0x1d7   :  { %v1886_v34 = vadd.f32 %v1885_v32, %v1884_v9 }
 0x1d9   :  { %v1887_v35 = vpop.f32.mrb[34].mxu1  ;;  %v1142_v19 = vadd.f32 %v1886_v34, %v3092_v44  ;;  %v1413_v34 = vld [vmem:[%s3303_s5] sm:$0x7] }
 0x1da   :  { %v1888_v16 = vpop.f32.mrb[35].mxu1 }
 0x1db   :  { %v3057_v50 = vadd.f32 %v1888_v16, %v1887_v35 }
 0x1dd   :  { %v1890_v36 = vpop.f32.mrb[36].mxu1 }
 0x1de   :  { %v1891_v37 = vpop.f32.mrb[37].mxu1 }
 0x1df   :  { %v3059_v39 = vadd.f32 %v1891_v37, %v1890_v36 }
 0x1e1   :  { %v1893_v40 = vpop.f32.mrb[38].mxu1 }
 0x1e2   :  { %v1894_v42 = vpop.f32.mrb[39].mxu1 }
 0x1e3   :  { %v3061_v14 = vadd.f32 %v1894_v42, %v1893_v40  ;;  %v1147_v42 = vadd.f32 %v3057_v50, %v3092_v44  ;;  %v1152_v50 = vadd.f32 %v3059_v39, %v3092_v44 }
 0x1e5   :  { %v1896_v7 = vpop.f32.mrb[40].mxu1 }
 0x1e6   :  { %v1897_v61 = vpop.f32.mrb[41].mxu1 }
 0x1e7   :  { %v3063_v5 = vadd.f32 %v1897_v61, %v1896_v7 }
 0x1e9   :  { %v1899_v38 = vpop.f32.mrb[42].mxu1 }
 0x1ea   :  { %v1900_v8 = vpop.f32.mrb[43].mxu1 }
 0x1eb   :  { %v3065_v29 = vadd.f32 %v1900_v8, %v1899_v38 }
 0x1ed   :  { %v1902_v45 = vpop.f32.mrb[44].mxu1 }
 0x1ee   :  { %v1903_v59 = vpop.f32.mrb[45].mxu1 }
 0x1ef   :  { %v3067_v48 = vadd.f32 %v1903_v59, %v1902_v45 }
 0x1f1   :  { %v1905_v54 = vpop.f32.mrb[46].mxu1 }
 0x1f2   :  { %v1906_v53 = vpop.f32.mrb[47].mxu1 }
 0x1f3   :  { %v3069_v27 = vadd.f32 %v1906_v53, %v1905_v54 }
 0x1f5   :  { %v1908_v55 = vpop.f32.mrb[48].mxu1 }
 0x1f6   :  { %v1909_v22 = vpop.f32.mrb[49].mxu1 }
 0x1f7   :  { %v3071_v56 = vadd.f32 %v1909_v22, %v1908_v55  ;;  %v3111_v55 = vrot.slane %v1413_v34, %v2868_v4  ;;  %v1157_v4 = vadd.f32 %v3061_v14, %v3092_v44 }
 0x1f9   :  { %v1911_v51 = vpop.f32.mrb[50].mxu1 }
 0x1fa   :  { %v1912_v60 = vpop.f32.mrb[51].mxu1 }
 0x1fb   :  { %v3073_v43 = vadd.f32 %v1912_v60, %v1911_v51  ;;  %v3117_v60 = vrot.slane %v1413_v34, %v2876_v6 }
 0x1fd   :  { %v1914_v63 = vpop.f32.mrb[52].mxu1 }
 0x1fe   :  { %v1915_v20 = vpop.f32.mrb[53].mxu1 }
 0x1ff   :  { %v3075_v1 = vadd.f32 %v1915_v20, %v1914_v63 }
 0x201   :  { %v1917_v62 = vpop.f32.mrb[54].mxu1 }
 0x202   :  { %v1918_v17 = vpop.f32.mrb[55].mxu1 }
 0x203   :  { %v3077_v41 = vadd.f32 %v1918_v17, %v1917_v62 }
 0x205   :  { %v1920_v10 = vpop.f32.mrb[56].mxu1 }
 0x206   :  { %v1921_v28 = vpop.f32.mrb[57].mxu1 }
 0x207   :  { %v3079_v11 = vadd.f32 %v1921_v28, %v1920_v10 }
 0x209   :  { %v1923_v58 = vpop.f32.mrb[58].mxu1 }
 0x20a   :  { %v1924_v12 = vpop.f32.mrb[59].mxu1 }
 0x20b   :  { %v3081_v49 = vadd.f32 %v1924_v12, %v1923_v58  ;;  %v3123_v58 = vrot.slane %v1413_v34, %v2972_v57  ;;  %v1162_v57 = vadd.f32 %v3063_v5, %v3092_v44  ;;  %v1167_v34 = vadd.f32 %v3065_v29, %v3092_v44 }
 0x20d   :  { %v1926_v13 = vpop.f32.mrb[60].mxu1 }
 0x20e   :  { %v1927_v25 = vpop.f32.mrb[61].mxu1 }
 0x20f   :  { %v3083_v15 = vadd.f32 %v1927_v25, %v1926_v13 }
 0x211   :  { %v1929_v21 = vpop.f32.mrb[62].mxu1 }
 0x212   :  { %v1930_v47 = vpop.f32.mrb[63].mxu1 }
 0x213   :  { %v3094_v52 = vadd.f32 %v1930_v47, %v1929_v21 }
 0x215   :  { %v980_v26 = vpop.f32.mrb[32].mxu0  ;;  %v1964_v31 = vpop.f32.mrb[64].mxu1 }
 0x216   :  { %v2224_v46 = vadd.f32 %v980_v26, %v3089_v24  ;;  %v982_v0 = vpop.f32.mrb[33].mxu0  ;;  %v1965_v33 = vpop.f32.mrb[65].mxu1 }
 0x217   :  { %v2225_v30 = vadd.f32 %v982_v0, %v3097_v18  ;;  %v1966_v9 = vadd.f32 %v1965_v33, %v1964_v31 }
 0x218   :  { %2422 = vtanh.f32 %v2224_v46 }
 0x219   :  { %2424 = vtanh.f32 %v2225_v30  ;;  %v1287_v32 = vadd.f32 %v1966_v9, %v1142_v19  ;;  %v986_v35 = vpop.f32.mrb[34].mxu0  ;;  %v1967_v16 = vpop.f32.mrb[66].mxu1 }
 0x21a   :  { %v2226_v36 = vadd.f32 %v986_v35, %v3089_v24  ;;  %v988_v37 = vpop.f32.mrb[35].mxu0  ;;  %v1968_v40 = vpop.f32.mrb[67].mxu1 }
 0x21b   :  { %2426 = vtanh.f32 %v1287_v32  ;;  %v2227_v7 = vadd.f32 %v988_v37, %v3097_v18  ;;  %v1969_v61 = vadd.f32 %v1968_v40, %v1967_v16 }
 0x21c   :  { %2428 = vtanh.f32 %v2226_v36 }
 0x21d   :  { %2430 = vtanh.f32 %v2227_v7  ;;  %v1292_v38 = vadd.f32 %v1969_v61, %v1147_v42  ;;  %v992_v8 = vpop.f32.mrb[36].mxu0  ;;  %v1970_v45 = vpop.f32.mrb[68].mxu1 }
 0x21e   :  { %v2228_v59 = vadd.f32 %v992_v8, %v3089_v24  ;;  %v994_v54 = vpop.f32.mrb[37].mxu0  ;;  %v1971_v53 = vpop.f32.mrb[69].mxu1 }
 0x21f   :  { %2432 = vtanh.f32 %v1292_v38  ;;  %v2229_v22 = vadd.f32 %v994_v54, %v3097_v18  ;;  %v1972_v51 = vadd.f32 %v1971_v53, %v1970_v45 }
 0x220   :  { %2434 = vtanh.f32 %v2228_v59 }
 0x221   :  { %2436 = vtanh.f32 %v2229_v22  ;;  %v1297_v63 = vadd.f32 %v1972_v51, %v1152_v50  ;;  %v998_v20 = vpop.f32.mrb[38].mxu0  ;;  %v1973_v62 = vpop.f32.mrb[70].mxu1 }
 0x222   :  { %v2423_v17 = vpop.eup %2422  ;;  %v2230_v10 = vadd.f32 %v998_v20, %v3089_v24  ;;  %v1000_v28 = vpop.f32.mrb[39].mxu0 }
 0x223   :  { %v1974_v39 = vpop.f32.mrb[71].mxu1  ;;  %v2425_v12 = vpop.eup %2424  ;;  %2438 = vtanh.f32 %v1297_v63  ;;  %v2231_v6 = vadd.f32 %v1000_v28, %v3097_v18  ;;  %v1430_v25 = vmul.f32 %v2423_v17, %v3111_v55  ;;  %v1172_v28 = vadd.f32 %v3067_v48, %v3092_v44 }
 0x224   :  { %v1975_v13 = vadd.f32 %v1974_v39, %v1973_v62  ;;  %2440 = vtanh.f32 %v2230_v10  ;;  %v1431_v23 = vmul.f32 %v2425_v12, %v3117_v60 }
 0x225   :  { %v2427_v21 = vpop.eup %2426  ;;  %2442 = vtanh.f32 %v2231_v6  ;;  %v1004_v47 = vpop.f32.mrb[40].mxu0 }
 0x226   :  { %v1302_v14 = vadd.f32 %v1975_v13, %v1157_v4  ;;  %v1976_v26 = vpop.f32.mrb[72].mxu1  ;;  %v2429_v31 = vpop.eup %2428  ;;  %v2232_v46 = vadd.f32 %v1004_v47, %v3089_v24  ;;  %v1432_v19 = vmul.f32 %v2427_v21, %v3123_v58  ;;  %v1478_v30 = vadd.f32 %v1431_v23, %v1430_v25 }
 0x227   :  { %v1006_v0 = vpop.f32.mrb[41].mxu0  ;;  %v1977_v33 = vpop.f32.mrb[73].mxu1  ;;  %v1433_v16 = vmul.f32 %v2429_v31, %v3111_v55 }
 0x228   :  { %v2431_v9 = vpop.eup %2430  ;;  %2444 = vtanh.f32 %v1302_v14  ;;  %v2233_v32 = vadd.f32 %v1006_v0, %v3097_v18  ;;  %v1978_v35 = vadd.f32 %v1977_v33, %v1976_v26  ;;  %v1479_v36 = vadd.f32 %v1478_v30, %v1432_v19 }
 0x229   :  { %2446 = vtanh.f32 %v2232_v46  ;;  %v1434_v37 = vmul.f32 %v2431_v9, %v3117_v60  ;;  %v2433_v40 = vpop.eup %2432  ;;  %v1010_v42 = vpop.f32.mrb[42].mxu0  ;;  %v1177_v19 = vadd.f32 %v3069_v27, %v3092_v44 }
 0x22a   :  { %2448 = vtanh.f32 %v2233_v32  ;;  %v1307_v5 = vadd.f32 %v1978_v35, %v1162_v57  ;;  %v1979_v7 = vpop.f32.mrb[74].mxu1  ;;  %v2435_v61 = vpop.eup %2434  ;;  %v2234_v38 = vadd.f32 %v1010_v42, %v3089_v24  ;;  %1480 = vadd.xlane.f32.xlu0 %v1479_v36  ;;  %v1435_v59 = vmul.f32 %v2433_v40, %v3123_v58 }
 0x22b   :  { %v1012_v8 = vpop.f32.mrb[43].mxu0  ;;  %v1980_v45 = vpop.f32.mrb[75].mxu1  ;;  %v1482_v54 = vadd.f32 %v1434_v37, %v1433_v16  ;;  %v1436_v51 = vmul.f32 %v2435_v61, %v3111_v55 }
 0x22c   :  { %v2437_v53 = vpop.eup %2436  ;;  %2450 = vtanh.f32 %v1307_v5  ;;  %v2235_v50 = vadd.f32 %v1012_v8, %v3097_v18  ;;  %v1981_v22 = vadd.f32 %v1980_v45, %v1979_v7  ;;  %v1182_v45 = vadd.f32 %v3071_v56, %v3092_v44 }
 0x22d   :  { %2452 = vtanh.f32 %v2234_v38  ;;  %v1483_v63 = vadd.f32 %v1482_v54, %v1435_v59  ;;  %v1437_v20 = vmul.f32 %v2437_v53, %v3117_v60  ;;  %v2439_v29 = vpop.eup %2438  ;;  %v1016_v17 = vpop.f32.mrb[44].mxu0 }
 0x22e   :  { %2454 = vtanh.f32 %v2235_v50  ;;  %v1312_v62 = vadd.f32 %v1981_v22, %v1167_v34  ;;  %v1982_v4 = vpop.f32.mrb[76].mxu1  ;;  %v2441_v10 = vpop.eup %2440  ;;  %v2236_v39 = vadd.f32 %v1016_v17, %v3089_v24  ;;  %v1438_v13 = vmul.f32 %v2439_v29, %v3123_v58 }
 0x22f   :  { %v1018_v12 = vpop.f32.mrb[45].mxu0  ;;  %v1983_v6 = vpop.f32.mrb[77].mxu1  ;;  %1484 = vadd.xlane.f32.xlu0 %v1483_v63  ;;  %v1486_v25 = vadd.f32 %v1437_v20, %v1436_v51  ;;  %v1439_v47 = vmul.f32 %v2441_v10, %v3111_v55 }
 0x230   :  { %v2443_v23 = vpop.eup %2442  ;;  %2456 = vtanh.f32 %v1312_v62  ;;  %v2237_v21 = vadd.f32 %v1018_v12, %v3097_v18  ;;  %v1984_v14 = vadd.f32 %v1983_v6, %v1982_v4  ;;  %v1187_v12 = vadd.f32 %v3073_v43, %v3092_v44 }
 0x231   :  { %2458 = vtanh.f32 %v2236_v39  ;;  %v1487_v26 = vadd.f32 %v1486_v25, %v1438_v13  ;;  %v1440_v31 = vmul.f32 %v2443_v23, %v3117_v60  ;;  %v1022_v46 = vpop.f32.mrb[46].mxu0  ;;  %v1985_v0 = vpop.f32.mrb[78].mxu1 }
 0x232   :  { %v2445_v48 = vpop.eup %2444  ;;  %2460 = vtanh.f32 %v2237_v21  ;;  %v1317_v57 = vadd.f32 %v1984_v14, %v1172_v28  ;;  %v2238_v30 = vadd.f32 %v1022_v46, %v3089_v24  ;;  %v1024_v9 = vpop.f32.mrb[47].mxu0 }
 0x233   :  { %v2447_v33 = vpop.eup %2446  ;;  %v1986_v32 = vpop.f32.mrb[79].mxu1  ;;  %1488 = vadd.xlane.f32.xlu1 %v1487_v26  ;;  %v1441_v35 = vmul.f32 %v2445_v48, %v3123_v58  ;;  %v1490_v16 = vadd.f32 %v1440_v31, %v1439_v47  ;;  %v2239_v37 = vadd.f32 %v1024_v9, %v3097_v18 }
 0x234   :  { %v2449_v36 = vpop.eup %2448  ;;  %2462 = vtanh.f32 %v1317_v57  ;;  %v1987_v40 = vadd.f32 %v1986_v32, %v1985_v0  ;;  %v1442_v5 = vmul.f32 %v2447_v33, %v3111_v55 }
 0x235   :  { %2464 = vtanh.f32 %v2238_v30  ;;  %v1491_v42 = vadd.f32 %v1490_v16, %v1441_v35  ;;  %v1443_v7 = vmul.f32 %v2449_v36, %v3117_v60  ;;  %v1028_v34 = vpop.f32.mrb[48].mxu0  ;;  %v1988_v38 = vpop.f32.mrb[80].mxu1  ;;  %v1192_v30 = vadd.f32 %v3075_v1, %v3092_v44 }
 0x236   :  { %v2451_v27 = vpop.eup %2450  ;;  %2466 = vtanh.f32 %v2239_v37  ;;  %v1322_v61 = vadd.f32 %v1987_v40, %v1177_v19  ;;  %v2240_v59 = vadd.f32 %v1028_v34, %v3089_v24  ;;  %v1030_v54 = vpop.f32.mrb[49].mxu0 }
 0x237   :  { %v2453_v8 = vpop.eup %2452  ;;  %v1989_v53 = vpop.f32.mrb[81].mxu1  ;;  %1492 = vadd.xlane.f32.xlu1 %v1491_v42  ;;  %v1444_v50 = vmul.f32 %v2451_v27, %v3123_v58  ;;  %v1494_v22 = vadd.f32 %v1443_v7, %v1442_v5  ;;  %v2241_v63 = vadd.f32 %v1030_v54, %v3097_v18 }
 0x238   :  { %v2455_v51 = vpop.eup %2454  ;;  %2468 = vtanh.f32 %v1322_v61  ;;  %v1990_v20 = vadd.f32 %v1989_v53, %v1988_v38  ;;  %v1445_v29 = vmul.f32 %v2453_v8, %v3111_v55 }
 0x239   :  { %2470 = vtanh.f32 %v2240_v59  ;;  %v1495_v62 = vadd.f32 %v1494_v22, %v1444_v50  ;;  %v1446_v17 = vmul.f32 %v2455_v51, %v3117_v60  ;;  %v1034_v10 = vpop.f32.mrb[50].mxu0  ;;  %v1991_v28 = vpop.f32.mrb[82].mxu1 }
 0x23a   :  { %v2457_v56 = vpop.eup %2456  ;;  %2472 = vtanh.f32 %v2241_v63  ;;  %v1327_v4 = vadd.f32 %v1990_v20, %v1182_v45  ;;  %v2242_v6 = vadd.f32 %v1034_v10, %v3089_v24  ;;  %v1036_v13 = vpop.f32.mrb[51].mxu0  ;;  %v1197_v45 = vadd.f32 %v3077_v41, %v3092_v44 }
 0x23b   :  { %v2459_v39 = vpop.eup %2458  ;;  %v1992_v25 = vpop.f32.mrb[83].mxu1  ;;  %1496 = vadd.xlane.f32.xlu0 %v1495_v62  ;;  %v1447_v23 = vmul.f32 %v2457_v56, %v3123_v58  ;;  %v1498_v21 = vadd.f32 %v1446_v17, %v1445_v29  ;;  %v2243_v47 = vadd.f32 %v1036_v13, %v3097_v18 }
 0x23c   :  { %v2461_v14 = vpop.eup %2460  ;;  %2474 = vtanh.f32 %v1327_v4  ;;  %v1993_v26 = vadd.f32 %v1992_v25, %v1991_v28  ;;  %v1448_v31 = vmul.f32 %v2459_v39, %v3111_v55  ;;  %v1202_v39 = vadd.f32 %v3079_v11, %v3092_v44 }
 0x23d   :  { %2476 = vtanh.f32 %v2242_v6  ;;  %v1499_v48 = vadd.f32 %v1498_v21, %v1447_v23  ;;  %v1449_v57 = vmul.f32 %v2461_v14, %v3117_v60  ;;  %v1040_v0 = vpop.f32.mrb[52].mxu0  ;;  %v1994_v33 = vpop.f32.mrb[84].mxu1 }
 0x23e   :  { %v2463_v43 = vpop.eup %2462  ;;  %2478 = vtanh.f32 %v2243_v47  ;;  %v1332_v46 = vadd.f32 %v1993_v26, %v1187_v12  ;;  %v2244_v9 = vadd.f32 %v1040_v0, %v3089_v24  ;;  %v1042_v32 = vpop.f32.mrb[53].mxu0 }
 0x23f   :  { %v2465_v19 = vpop.eup %2464  ;;  %v1995_v35 = vpop.f32.mrb[85].mxu1  ;;  %1500 = vadd.xlane.f32.xlu1 %v1499_v48  ;;  %v1450_v16 = vmul.f32 %v2463_v43, %v3123_v58  ;;  %v1502_v36 = vadd.f32 %v1449_v57, %v1448_v31  ;;  %v2245_v40 = vadd.f32 %v1042_v32, %v3097_v18 }
 0x240   :  { %v2467_v37 = vpop.eup %2466  ;;  %2480 = vtanh.f32 %v1332_v46  ;;  %v1996_v5 = vadd.f32 %v1995_v35, %v1994_v33  ;;  %v1451_v42 = vmul.f32 %v2465_v19, %v3111_v55  ;;  %v1207_v33 = vadd.f32 %v3081_v49, %v3092_v44 }
 0x241   :  { %2482 = vtanh.f32 %v2244_v9  ;;  %v1503_v7 = vadd.f32 %v1502_v36, %v1450_v16  ;;  %v1452_v27 = vmul.f32 %v2467_v37, %v3117_v60  ;;  %v1046_v34 = vpop.f32.mrb[54].mxu0  ;;  %v1997_v38 = vpop.f32.mrb[86].mxu1 }
 0x242   :  { %v2469_v1 = vpop.eup %2468  ;;  %2484 = vtanh.f32 %v2245_v40  ;;  %v1337_v61 = vadd.f32 %v1996_v5, %v1192_v30  ;;  %v2246_v59 = vadd.f32 %v1046_v34, %v3089_v24  ;;  %v1048_v54 = vpop.f32.mrb[55].mxu0  ;;  %v1212_v34 = vadd.f32 %v3083_v15, %v3092_v44 }
 0x243   :  { %v2471_v8 = vpop.eup %2470  ;;  %v1998_v53 = vpop.f32.mrb[87].mxu1  ;;  %1504 = vadd.xlane.f32.xlu0 %v1503_v7  ;;  %v1453_v50 = vmul.f32 %v2469_v1, %v3123_v58  ;;  %v1506_v22 = vadd.f32 %v1452_v27, %v1451_v42  ;;  %v2247_v63 = vadd.f32 %v1048_v54, %v3097_v18 }
 0x244   :  { %v2473_v51 = vpop.eup %2472  ;;  %2486 = vtanh.f32 %v1337_v61  ;;  %v1999_v20 = vadd.f32 %v1998_v53, %v1997_v38  ;;  %v1454_v29 = vmul.f32 %v2471_v8, %v3111_v55 }
 0x245   :  { %2488 = vtanh.f32 %v2246_v59  ;;  %v1507_v62 = vadd.f32 %v1506_v22, %v1453_v50  ;;  %v1455_v17 = vmul.f32 %v2473_v51, %v3117_v60  ;;  %v1052_v4 = vpop.f32.mrb[56].mxu0  ;;  %v2000_v10 = vpop.f32.mrb[88].mxu1 }
 0x246   :  { %v2475_v41 = vpop.eup %2474  ;;  %2490 = vtanh.f32 %v2247_v63  ;;  %v1342_v56 = vadd.f32 %v1999_v20, %v1197_v45  ;;  %v2248_v12 = vadd.f32 %v1052_v4, %v3089_v24  ;;  %v1054_v6 = vpop.f32.mrb[57].mxu0 }
 0x247   :  { %v2477_v28 = vpop.eup %2476  ;;  %v2001_v13 = vpop.f32.mrb[89].mxu1  ;;  %1508 = vadd.xlane.f32.xlu1 %v1507_v62  ;;  %v1456_v25 = vmul.f32 %v2475_v41, %v3123_v58  ;;  %v1510_v23 = vadd.f32 %v1455_v17, %v1454_v29  ;;  %v2249_v14 = vadd.f32 %v1054_v6, %v3097_v18 }
 0x248   :  { %v2479_v21 = vpop.eup %2478  ;;  %2492 = vtanh.f32 %v1342_v56  ;;  %v2002_v47 = vadd.f32 %v2001_v13, %v2000_v10  ;;  %v1457_v26 = vmul.f32 %v2477_v28, %v3111_v55  ;;  %v1217_v56 = vadd.f32 %v3094_v52, %v3092_v44 }
 0x249   :  { %2494 = vtanh.f32 %v2248_v12  ;;  %v1511_v31 = vadd.f32 %v1510_v23, %v1456_v25  ;;  %v1458_v48 = vmul.f32 %v2479_v21, %v3117_v60  ;;  %v1058_v43 = vpop.f32.mrb[58].mxu0  ;;  %v2003_v46 = vpop.f32.mrb[90].mxu1 }
 0x24a   :  { %v2481_v11 = vpop.eup %2480  ;;  %2496 = vtanh.f32 %v2249_v14  ;;  %v1347_v57 = vadd.f32 %v2002_v47, %v1202_v39  ;;  %v2250_v19 = vadd.f32 %v1058_v43, %v3089_v24  ;;  %v1060_v30 = vpop.f32.mrb[59].mxu0 }
 0x24b   :  { %v2483_v0 = vpop.eup %2482  ;;  %v2004_v9 = vpop.f32.mrb[91].mxu1  ;;  %1512 = vadd.xlane.f32.xlu0 %v1511_v31  ;;  %v1459_v32 = vmul.f32 %v2481_v11, %v3123_v58  ;;  %v1514_v35 = vadd.f32 %v1458_v48, %v1457_v26  ;;  %v2251_v36 = vadd.f32 %v1060_v30, %v3097_v18 }
 0x24c   :  { %v2485_v16 = vpop.eup %2484  ;;  %2498 = vtanh.f32 %v1347_v57  ;;  %v2005_v37 = vadd.f32 %v2004_v9, %v2003_v46  ;;  %v1460_v40 = vmul.f32 %v2483_v0, %v3111_v55 }
 0x24d   :  { %2500 = vtanh.f32 %v2250_v19  ;;  %v1515_v5 = vadd.f32 %v1514_v35, %v1459_v32  ;;  %v1461_v42 = vmul.f32 %v2485_v16, %v3117_v60  ;;  %v1064_v27 = vpop.f32.mrb[60].mxu0  ;;  %v2006_v1 = vpop.f32.mrb[92].mxu1 }
 0x24e   :  { %v2487_v49 = vpop.eup %2486  ;;  %2502 = vtanh.f32 %v2251_v36  ;;  %v1352_v7 = vadd.f32 %v2005_v37, %v1207_v33  ;;  %v2252_v38 = vadd.f32 %v1064_v27, %v3089_v24  ;;  %v1066_v8 = vpop.f32.mrb[61].mxu0 }
 0x24f   :  { %v2489_v61 = vpop.eup %2488  ;;  %v2007_v45 = vpop.f32.mrb[93].mxu1  ;;  %1516 = vadd.xlane.f32.xlu1 %v1515_v5  ;;  %v1462_v59 = vmul.f32 %v2487_v49, %v3123_v58  ;;  %v1518_v54 = vadd.f32 %v1461_v42, %v1460_v40  ;;  %v2253_v50 = vadd.f32 %v1066_v8, %v3097_v18  ;;  %v3225_v8 = vstv %s3304_s6  ;;  %s2635_s6 = smov [#allocation6]  }
 0x250   :  { %v2491_v53 = vpop.eup %2490  ;;  %2504 = vtanh.f32 %v1352_v7  ;;  %v2008_v22 = vadd.f32 %v2007_v45, %v2006_v1  ;;  %v1463_v51 = vmul.f32 %v2489_v61, %v3111_v55  ;;  %s1791_s9 = sshll.u32 %s2635_s6, 4  ;;  %s1792_s9 = int_to_ptr.vmem [resolvable:$true] %s1791_s9 }
 0x251   :  { %2506 = vtanh.f32 %v2252_v38  ;;  %v1519_v63 = vadd.f32 %v1518_v54, %v1462_v59  ;;  %v1464_v20 = vmul.f32 %v2491_v53, %v3117_v60  ;;  %v1070_v62 = vpop.f32.mrb[62].mxu0  ;;  %v2009_v17 = vpop.f32.mrb[94].mxu1  ;;  %s2604_s10 = scalar_lea.vmem %s1792_s9, 16  ;;  %s2608_s11 = scalar_lea.vmem %s1792_s9, 32 }
 0x252   :  { %v2493_v15 = vpop.eup %2492  ;;  %2508 = vtanh.f32 %v2253_v50  ;;  %v1357_v29 = vadd.f32 %v2008_v22, %v1212_v34  ;;  %v2254_v4 = vadd.f32 %v1070_v62, %v3089_v24  ;;  %v1072_v10 = vpop.f32.mrb[63].mxu0  ;;  %p2605_p8 = scmp.ne.s32.totalorder %s1792_s9, %s2604_s10  ;;  %p2609_p9 = scmp.lt.s32.totalorder %s1792_s9, %s1792_s9 }
 0x253   :  { %v2495_v41 = vpop.eup %2494  ;;  %v2010_v28 = vpop.f32.mrb[95].mxu1  ;;  %1520 = vadd.xlane.f32.xlu0 %v1519_v63  ;;  %v1465_v39 = vmul.f32 %v2493_v15, %v3123_v58  ;;  %v1522_v12 = vadd.f32 %v1464_v20, %v1463_v51  ;;  %v2255_v13 = vadd.f32 %v1072_v10, %v3097_v18  ;;  %p2610_p10 = scmp.lt.s32.totalorder %s2608_s11, %s2604_s10 }
 0x254   :  { %v2497_v6 = vpop.eup %2496  ;;  %2510 = vtanh.f32 %v1357_v29  ;;  %v2011_v25 = vadd.f32 %v2010_v28, %v2009_v17  ;;  %v1466_v23 = vmul.f32 %v2495_v41, %v3111_v55 }
 0x255   :  { %2512 = vtanh.f32 %v2254_v4  ;;  %v1523_v21 = vadd.f32 %v1522_v12, %v1465_v39  ;;  %v1467_v14 = vmul.f32 %v2497_v6, %v3117_v60  ;;  %p2611_p11 = por %p2610_p10, %p2609_p9 }
 0x256   :  { %v2499_v44 = vpop.eup %2498  ;;  %2514 = vtanh.f32 %v2255_v13  ;;  %v1362_v24 = vadd.f32 %v2011_v25, %v1217_v56 }
 0x257   :  { %v2501_v52 = vpop.eup %2500  ;;  %1524 = vadd.xlane.f32.xlu1 %v1523_v21  ;;  %v1468_v47 = vmul.f32 %v2499_v44, %v3123_v58  ;;  %v1526_v26 = vadd.f32 %v1467_v14, %v1466_v23  ;;  %p2612_p12 = pnand %p2611_p11, %p2605_p8 }
 0x258   :  { %v2503_v31 = vpop.eup %2502  ;;  %2516 = vtanh.f32 %v1362_v24  ;;  %v1469_v48 = vmul.f32 %v2501_v52, %v3111_v55 }
 0x259   :  { %v1527_v18 = vadd.f32 %v1526_v26, %v1468_v47  ;;  %v1470_v11 = vmul.f32 %v2503_v31, %v3117_v60 }
 0x25a   :  { %v2505_v57 = vpop.eup %2504 }
 0x25b   :  { %v2507_v43 = vpop.eup %2506  ;;  %1528 = vadd.xlane.f32.xlu0 %v1527_v18  ;;  %v1471_v46 = vmul.f32 %v2505_v57, %v3123_v58  ;;  %v1530_v0 = vadd.f32 %v1470_v11, %v1469_v48 }
 0x25c   :  { %v2509_v33 = vpop.eup %2508  ;;  %v1472_v19 = vmul.f32 %v2507_v43, %v3111_v55 }
 0x25d   :  { %v1531_v30 = vadd.f32 %v1530_v0, %v1471_v46  ;;  %v1473_v9 = vmul.f32 %v2509_v33, %v3117_v60 }
 0x25e   :  { %v2511_v32 = vpop.eup %2510 }
 0x25f   :  { %v2513_v35 = vpop.eup %2512  ;;  %1532 = vadd.xlane.f32.xlu1 %v1531_v30  ;;  %v1474_v16 = vmul.f32 %v2511_v32, %v3123_v58  ;;  %v1534_v36 = vadd.f32 %v1473_v9, %v1472_v19 }
 0x260   :  { %v2515_v37 = vpop.eup %2514  ;;  %v1475_v40 = vmul.f32 %v2513_v35, %v3111_v55 }
 0x261   :  { %v1535_v5 = vadd.f32 %v1534_v36, %v1474_v16  ;;  %v1476_v42 = vmul.f32 %v2515_v37, %v3117_v60 }
 0x262   :  { %v2517_v49 = vpop.eup %2516 }
 0x263   :  { %1536 = vadd.xlane.f32.xlu0 %v1535_v5  ;;  %v1477_v7 = vmul.f32 %v2517_v49, %v3123_v58  ;;  %v1538_v27 = vadd.f32 %v1476_v42, %v1475_v40 }
 0x265   :  { %v1539_v1 = vadd.f32 %v1538_v27, %v1477_v7 }
 0x267   :  { %1540 = vadd.xlane.f32.xlu1 %v1539_v1 }
 0x2b7   :  { %v1481_v61 = vpop.xlane.xlu0 %1480 }
 0x2b8   :  { %v1544_v59 = vadd.f32 %v3225_v8, %v1481_v61 }
 0x2ba   :  { %v1836_v50 = vmul.f32 -1.442695, %v1544_v59 }
 0x2bc   :  { %v1485_v38 = vpop.xlane.xlu0 %1484  ;;  %2518 = vpow2.f32 %v1836_v50 }
 0x2bd   :  { %v1545_v54 = vadd.f32 %v3225_v8, %v1485_v38 }
 0x2bf   :  { %v1837_v63 = vmul.f32 -1.442695, %v1545_v54 }
 0x2c0   :  { %v1489_v34 = vpop.xlane.xlu1 %1488 }
 0x2c1   :  { %v1546_v58 = vadd.f32 %v3225_v8, %v1489_v34  ;;  %2520 = vpow2.f32 %v1837_v63 }
 0x2c3   :  { %v1838_v29 = vmul.f32 -1.442695, %v1546_v58 }
 0x2c4   :  { %v1493_v45 = vpop.xlane.xlu1 %1492 }
 0x2c5   :  { %v1547_v22 = vadd.f32 %v3225_v8, %v1493_v45  ;;  %2522 = vpow2.f32 %v1838_v29 }
 0x2c6   :  { %v2519_v26 = vpop.eup %2518 }
 0x2c7   :  { %v1839_v17 = vmul.f32 -1.442695, %v1547_v22  ;;  %v1608_v43 = vadd.f32 1.0, %v2519_v26 }
 0x2c8   :  { %v1497_v55 = vpop.xlane.xlu0 %1496 }
 0x2c9   :  { %v1548_v20 = vadd.f32 %v3225_v8, %v1497_v55  ;;  %2524 = vpow2.f32 %v1839_v17  ;;  %v3244_v55 = vand.u32 127, %v76_v2 }
 0x2cb   :  { %v1840_v4 = vmul.f32 -1.442695, %v1548_v20  ;;  %v2521_v18 = vpop.eup %2520  ;;  %v1678_v50 = vadd.s32 4294967288, %v3244_v55  ;;  %v1676_v2 = vsub.s32 %v3244_v55, %v2865_v3  ;;  %v1692_v20 = vadd.s32 4294967272, %v3244_v55 }
 0x2cc   :  { %v1501_v60 = vpop.xlane.xlu1 %1500  ;;  %v1609_v19 = vadd.f32 1.0, %v2521_v18  ;;  %v1741_v18 = vadd.s32 4294967216, %v3244_v55 }
 0x2cd   :  { %v1549_v62 = vadd.f32 %v3225_v8, %v1501_v60  ;;  %2526 = vpow2.f32 %v1840_v4  ;;  %v1706_v4 = vadd.s32 4294967256, %v3244_v55 }
 0x2cf   :  { %v1841_v39 = vmul.f32 -1.442695, %v1549_v62  ;;  %v2523_v57 = vpop.eup %2522  ;;  %v1699_v62 = vadd.s32 4294967264, %v3244_v55 }
 0x2d0   :  { %v1505_v53 = vpop.xlane.xlu0 %1504  ;;  %v1610_v9 = vadd.f32 1.0, %v2523_v57 }
 0x2d1   :  { %v1550_v41 = vadd.f32 %v3225_v8, %v1505_v53  ;;  %2528 = vpow2.f32 %v1841_v39 }
 0x2d3   :  { %v1842_v6 = vmul.f32 -1.442695, %v1550_v41  ;;  %v2525_v0 = vpop.eup %2524 }
 0x2d4   :  { %v1509_v51 = vpop.xlane.xlu1 %1508  ;;  %v1611_v16 = vadd.f32 1.0, %v2525_v0 }
 0x2d5   :  { %v1551_v10 = vadd.f32 %v3225_v8, %v1509_v51  ;;  %2530 = vpow2.f32 %v1842_v6  ;;  %v1685_v51 = vadd.s32 4294967280, %v3244_v55 }
 0x2d7   :  { %v1843_v21 = vmul.f32 -1.442695, %v1551_v10  ;;  %v2527_v30 = vpop.eup %2526  ;;  %v1688_v39 = vsub.s32 %v1685_v51, %v2865_v3 }
 0x2d8   :  { %v1513_v15 = vpop.xlane.xlu0 %1512  ;;  %v1612_v5 = vadd.f32 1.0, %v2527_v30  ;;  %v1748_v30 = vadd.s32 4294967208, %v3244_v55 }
 0x2d9   :  { %v1552_v12 = vadd.f32 %v3225_v8, %v1513_v15  ;;  %2532 = vpow2.f32 %v1843_v21  ;;  %v1702_v21 = vsub.s32 %v1699_v62, %v2865_v3 }
 0x2db   :  { %v1844_v44 = vmul.f32 -1.442695, %v1552_v12  ;;  %v2529_v35 = vpop.eup %2528  ;;  %v1713_v12 = vadd.s32 4294967248, %v3244_v55 }
 0x2dc   :  { %v1517_v56 = vpop.xlane.xlu1 %1516  ;;  %v1613_v49 = vadd.f32 1.0, %v2529_v35 }
 0x2dd   :  { %v1553_v13 = vadd.f32 %v3225_v8, %v1517_v56  ;;  %2534 = vpow2.f32 %v1844_v44  ;;  %v1681_v56 = vsub.s32 %v1678_v50, %v2865_v3 }
 0x2df   :  { %v1845_v24 = vmul.f32 -1.442695, %v1553_v13  ;;  %v2531_v37 = vpop.eup %2530  ;;  %v1695_v13 = vsub.s32 %v1692_v20, %v2865_v3 }
 0x2e0   :  { %v1521_v28 = vpop.xlane.xlu0 %1520  ;;  %v1614_v1 = vadd.f32 1.0, %v2531_v37 }
 0x2e1   :  { %v1554_v25 = vadd.f32 %v3225_v8, %v1521_v28  ;;  %2536 = vpow2.f32 %v1845_v24  ;;  %v1709_v24 = vsub.s32 %v1706_v4, %v2865_v3 }
 0x2e3   :  { %v1846_v52 = vmul.f32 -1.442695, %v1554_v25  ;;  %v2533_v42 = vpop.eup %2532  ;;  %v1720_v25 = vadd.s32 4294967240, %v3244_v55 }
 0x2e4   :  { %v1525_v23 = vpop.xlane.xlu1 %1524  ;;  %v1615_v59 = vadd.f32 1.0, %v2533_v42  ;;  %v1744_v42 = vsub.s32 %v1741_v18, %v2865_v3 }
 0x2e5   :  { %v1555_v14 = vadd.f32 %v3225_v8, %v1525_v23  ;;  %2538 = vpow2.f32 %v1846_v52  ;;  %v1734_v52 = vadd.s32 4294967224, %v3244_v55 }
 0x2e7   :  { %v1847_v31 = vmul.f32 -1.442695, %v1555_v14  ;;  %v2535_v27 = vpop.eup %2534  ;;  %v1727_v14 = vadd.s32 4294967232, %v3244_v55  ;;  %v1737_v35 = vsub.s32 %v1734_v52, %v2865_v3 }
 0x2e8   :  { %v1529_v47 = vpop.xlane.xlu0 %1528  ;;  %v1616_v54 = vadd.f32 1.0, %v2535_v27 }
 0x2e9   :  { %v1556_v48 = vadd.f32 %v3225_v8, %v1529_v47  ;;  %2540 = vpow2.f32 %v1847_v31 }
 0x2eb   :  { %v1848_v11 = vmul.f32 -1.442695, %v1556_v48  ;;  %v2537_v34 = vpop.eup %2536  ;;  %v1716_v48 = vsub.s32 %v1713_v12, %v2865_v3 }
 0x2ec   :  { %v1533_v46 = vpop.xlane.xlu1 %1532  ;;  %v1617_v22 = vadd.f32 1.0, %v2537_v34 }
 0x2ed   :  { %v1557_v33 = vadd.f32 %v3225_v8, %v1533_v46  ;;  %2542 = vpow2.f32 %v1848_v11 }
 0x2ee   :  { %2544 = vrcp.f32 %v1608_v43  ;;  %v1723_v43 = vsub.s32 %v1720_v25, %v2865_v3 }
 0x2ef   :  { %v1849_v32 = vmul.f32 -1.442695, %v1557_v33  ;;  %v2539_v45 = vpop.eup %2538 }
 0x2f0   :  { %v1537_v36 = vpop.xlane.xlu0 %1536  ;;  %v1618_v63 = vadd.f32 1.0, %v2539_v45 }
 0x2f1   :  { %2546 = vpow2.f32 %v1849_v32  ;;  %v1558_v40 = vadd.f32 %v3225_v8, %v1537_v36  ;;  %v1755_v36 = vadd.s32 4294967200, %v3244_v55 }
 0x2f2   :  { %2548 = vrcp.f32 %v1609_v19  ;;  %v1730_v19 = vsub.s32 %v1727_v14, %v2865_v3 }
 0x2f3   :  { %2550 = vrcp.f32 %v1610_v9  ;;  %v1850_v7 = vmul.f32 -1.442695, %v1558_v40  ;;  %v2541_v60 = vpop.eup %2540 }
 0x2f4   :  { %2552 = vrcp.f32 %v1611_v16  ;;  %v1541_v61 = vpop.xlane.xlu1 %1540  ;;  %v1619_v15 = vadd.f32 1.0, %v2541_v60 }
 0x2f5   :  { %2554 = vpow2.f32 %v1850_v7  ;;  %v1559_v38 = vadd.f32 %v3225_v8, %v1541_v61  ;;  %v1769_v61 = vadd.s32 4294967184, %v3244_v55 }
 0x2f6   :  { %2556 = vrcp.f32 %v1612_v5 }
 0x2f7   :  { %2558 = vrcp.f32 %v1613_v49  ;;  %v1851_v53 = vmul.f32 -1.442695, %v1559_v38  ;;  %v2543_v58 = vpop.eup %2542  ;;  %v1762_v49 = vadd.s32 4294967192, %v3244_v55 }
 0x2f8   :  { %2560 = vrcp.f32 %v1614_v1  ;;  %v2545_v8 = vpop.eup %2544  ;;  %v1620_v17 = vadd.f32 1.0, %v2543_v58  ;;  %v1758_v58 = vsub.s32 %v1755_v36, %v2865_v3 }
 0x2f9   :  { %2562 = vpow2.f32 %v1851_v53  ;;  %v1677_v0 = vrot.slane %v2545_v8, %v1676_v2  ;;  %v1776_v8 = vadd.s32 4294967176, %v3244_v55 }
 0x2fa   :  { %2564 = vrcp.f32 %v1615_v59  ;;  %v1751_v59 = vsub.s32 %v1748_v30, %v2865_v3 }
 0x2fb   :  { %v2547_v29 = vpop.eup %2546  ;;  %2566 = vrcp.f32 %v1616_v54  ;;  %v1779_v55 = vsub.s32 %v1776_v8, %v2865_v3 }
 0x2fc   :  { %v2549_v41 = vpop.eup %2548  ;;  %2568 = vrcp.f32 %v1617_v22  ;;  %v1621_v10 = vadd.f32 1.0, %v2547_v29  ;;  %v1772_v29 = vsub.s32 %v1769_v61, %v2865_v3 }
 0x2fd   :  { %v2551_v28 = vpop.eup %2550  ;;  %2570 = vrcp.f32 %v1618_v63  ;;  %v1682_v31 = vrot.slane %v2549_v41, %v1681_v56  ;;  %v1765_v63 = vsub.s32 %v1762_v49, %v2865_v3 }
 0x2fe   :  { %v2553_v6 = vpop.eup %2552  ;;  %2572 = vrcp.f32 %v1619_v15  ;;  %v1689_v57 = vrot.slane %v2551_v28, %v1688_v39 }
 0x2ff   :  { %v2555_v23 = vpop.eup %2554  ;;  %2574 = vrcp.f32 %v1620_v17  ;;  %v1696_v33 = vrot.slane %v2553_v6, %v1695_v13  ;;  %v1684_v40 = vsel %vm1683_vm4, %v1682_v31, %v1677_v0 }
 0x300   :  { %v2557_v44 = vpop.eup %2556  ;;  %2576 = vrcp.f32 %v1621_v10  ;;  %v1622_v47 = vadd.f32 1.0, %v2555_v23  ;;  %v1691_v27 = vsel %vm1690_vm5, %v1689_v57, %v1684_v40 }
 0x301   :  { %v2559_v26 = vpop.eup %2558  ;;  %v1703_v32 = vrot.slane %v2557_v44, %v1702_v21  ;;  %v1698_v38 = vsel %vm1697_vm6, %v1696_v33, %v1691_v27 }
 0x302   :  { %v2561_v11 = vpop.eup %2560  ;;  %2578 = vrcp.f32 %v1622_v47  ;;  %v1710_v5 = vrot.slane %v2559_v26, %v1709_v24 }
 0x303   :  { %v2563_v46 = vpop.eup %2562  ;;  %v1717_v1 = vrot.slane %v2561_v11, %v1716_v48  ;;  %v1705_v54 = vsel %vm1704_vm7, %v1703_v32, %v1698_v38 }
 0x304   :  { %v2565_v9 = vpop.eup %2564  ;;  %v1623_v16 = vadd.f32 1.0, %v2563_v46  ;;  %v1712_v22 = vsel %vm1711_vm8, %v1710_v5, %v1705_v54 }
 0x305   :  { %v2567_v37 = vpop.eup %2566  ;;  %v1724_v45 = vrot.slane %v2565_v9, %v1723_v43  ;;  %v1719_v20 = vsel %vm1718_vm9, %v1717_v1, %v1712_v22 }
 0x306   :  { %v2569_v7 = vpop.eup %2568  ;;  %2580 = vrcp.f32 %v1623_v16  ;;  %v1731_v53 = vrot.slane %v2567_v37, %v1730_v19 }
 0x307   :  { %v2571_v34 = vpop.eup %2570  ;;  %v1738_v51 = vrot.slane %v2569_v7, %v1737_v35  ;;  %v1726_v62 = vsel %vm1725_vm10, %v1724_v45, %v1719_v20 }
 0x308   :  { %v2573_v60 = vpop.eup %2572  ;;  %v1745_v15 = vrot.slane %v2571_v34, %v1744_v42  ;;  %v1733_v56 = vsel %vm1732_vm11, %v1731_v53, %v1726_v62 }
 0x309   :  { %v2575_v50 = vpop.eup %2574  ;;  %v1752_v17 = vrot.slane %v2573_v60, %v1751_v59  ;;  %v1740_v10 = vsel %vm1739_vm12, %v1738_v51, %v1733_v56 }
 0x30a   :  { %v2577_v2 = vpop.eup %2576  ;;  %v1759_v4 = vrot.slane %v2575_v50, %v1758_v58  ;;  %v1747_v39 = vsel %vm1746_vm13, %v1745_v15, %v1740_v10 }
 0x30b   :  { %v1766_v28 = vrot.slane %v2577_v2, %v1765_v63  ;;  %v1754_v6 = vsel %vm1753_vm14, %v1752_v17, %v1747_v39 }
 0x30c   :  { %v2579_v41 = vpop.eup %2578  ;;  %v1761_v25 = vsel %vm1760_vm15, %v1759_v4, %v1754_v6 }
 0x30d   :  { %v1773_v12 = vrot.slane %v2579_v41, %v1772_v29  ;;  %v1768_v23 = vsel %vm1767_vm0, %v1766_v28, %v1761_v25 }
 0x30f   :  { %v1775_v14 = vsel %vm1774_vm1, %v1773_v12, %v1768_v23 }
 0x310   :  { %v2581_v13 = vpop.eup %2580 }
 0x311   :  { %v1780_v21 = vrot.slane %v2581_v13, %v1779_v55 }
 0x313   :  { %v1782_v44 = vsel %vm1781_vm2, %v1780_v21, %v1775_v14 }
 0x314   :  { %1784 = vst [vmem:[#allocation6] sm:$0x1] %v1782_v44 }
 0x315   :  { %2615 = shalt.err (!%p2612_p12)
}
 0x316   :  { %s2616_s14 = scalar_lea.hbm %s3305_s7, 16 }
 0x317   :  { %p2617_p13 = scmp.ne.s32.totalorder %s3305_s7, %s2616_s14  ;;  %p2620_p0 = scmp.lt.u32.totalorder %s2616_s14, %s3305_s7 }
 0x319   :  { %p2622_p1 = pnand %p2620_p0, %p2617_p13 }
 0x31b   :  { %2625 = shalt.err (!%p2622_p1)
}
 0x31c   :  { %1794 = dma.vmem_to_hbm [thread:$0]  %s1792_s9, 16, %s3305_s7, [#allocation5]  }
 0x31d   :  { %2628 = dma.done.wait [#allocation5], 16  }
 0x31e   :  { %2629 = vsyncadd [#allocation5], 4294967280 }
 0x31f   :  { %1798 = vsyncpa [#allocation4], 1 }
 0x320   :  { %1799 = vsyncpa [#allocation5], 1 }

</bundles_post_ra>
